<compile_context>
chip_gen: v7x
topology: tpu7x:2x2x1
jax: 0.10.0
libtpu: 0.0.40
codegen_flags: <defaults>
</compile_context>

<pallas_src>
import numpy as np
import jax
import jax.numpy as jnp
from jax.experimental import pallas as pl
from jax.experimental.pallas import tpu as pltpu

LENGTH = 16          # length <= 34  -> pre_net hidden = 64, pre_net out = length*4
DIM = 4              # pose dimension
FEAT = 32            # feat_size (use_pre_poses=False)
HID = 64             # pre_net hidden width
CIN = 4              # channels after .view(N, 4, -1)
C1 = 32              # conv channels
K = 3                # conv kernel size
BN_EPS = 1e-5
NEG_SLOPE = 0.2

L1 = LENGTH + 2      # after ConvTranspose1d #1 : 18
L2 = LENGTH + 4      # after ConvTranspose1d #2 : 20
L3 = LENGTH + 2      # after Conv1d #1          : 18
D1 = L1 * C1         # 576
D2 = L2 * C1         # 640
DOUT = LENGTH * DIM  # 64  (channels-last flattened output)

D1_PAD = 640         # 576 padded up to a multiple of 128
DOUT_PAD = 128       # 64 padded up to a full lane tile


# --------------------------------- kernel ----------------------------------

def pose_decoder_kernel(feat_ref,
                        w1_ref, c1_ref, w2_ref, c2_ref, w3_ref, c3_ref,
                        out_ref):
    # (TB, 32)bf16 @ (32, 640)bf16 -> f32   (pre_net + convT1 + BN2 folded)
    a = jnp.dot(feat_ref[...], w1_ref[...],
                preferred_element_type=jnp.float32) + c1_ref[...]
    a = jnp.where(a >= 0, a, NEG_SLOPE * a)
    # (TB, 640)bf16 @ (640, 640)bf16 -> f32 (convT2 + BN3 folded)
    a = jnp.dot(a.astype(jnp.bfloat16), w2_ref[...],
                preferred_element_type=jnp.float32) + c2_ref[...]
    a = jnp.where(a >= 0, a, NEG_SLOPE * a)
    # (TB, 640)bf16 @ (640, 128)bf16 -> f32 (conv3 composed with conv4, padded)
    out_ref[...] = (jnp.dot(a.astype(jnp.bfloat16), w3_ref[...],
                            preferred_element_type=jnp.float32)
                    + c3_ref[...]).astype(out_ref.dtype)


def _pick_batch_tile(n, batch_tile):
    if n <= batch_tile:
        return n                              # single full block (any size OK)
    tb = max(8, (batch_tile // 8) * 8)        # sublane-aligned
    # prefer a nearby tile that divides N so the last block isn't padded
    for cand in range(tb, max(7, tb - 256), -8):
        if n % cand == 0:
            return cand
    return tb


def pose_decoder_conv(feat, packed, *, batch_tile=2048):
    N = feat.shape[0]
    tb = _pick_batch_tile(N, batch_tile)
    grid = (pl.cdiv(N, tb),)

    W1, c1 = packed['W1'], packed['c1']
    W2, c2 = packed['W2'], packed['c2']
    W3, c3 = packed['W3'], packed['c3']

    def _fixed(a):
        nd = a.ndim
        return pl.BlockSpec(a.shape, lambda i, _nd=nd: (0,) * _nd)

    flops = 2 * N * (FEAT * D1_PAD + D1_PAD * D2 + D2 * DOUT_PAD)
    bytes_accessed = (2 * N * FEAT + 4 * N * DOUT_PAD
                      + 2 * (W1.size + W2.size + W3.size)
                      + 4 * (c1.size + c2.size + c3.size))

    out_flat = pl.pallas_call(
        pose_decoder_kernel,
        out_shape=jax.ShapeDtypeStruct((N, DOUT_PAD), jnp.float32),
        grid_spec=pltpu.PrefetchScalarGridSpec(
            num_scalar_prefetch=0,
            grid=grid,
            in_specs=[pl.BlockSpec((tb, FEAT), lambda i: (i, 0)),
                      _fixed(W1), _fixed(c1),
                      _fixed(W2), _fixed(c2),
                      _fixed(W3), _fixed(c3)],
            out_specs=pl.BlockSpec((tb, DOUT_PAD), lambda i: (i, 0)),
        ),
        compiler_params=pltpu.CompilerParams(
            dimension_semantics=("parallel",),
            vmem_limit_bytes=48 * 1024 * 1024),
        cost_estimate=pl.CostEstimate(flops=flops, transcendentals=0,
                                      bytes_accessed=bytes_accessed),
    )(feat.astype(jnp.bfloat16), W1, c1, W2, c2, W3, c3)
    # drop the 64 zero padding columns, reshape to (N, L, dim)
    return out_flat[:, :DOUT].reshape(N, LENGTH, DIM)


# --------------------------- parameter construction ---------------------------

def init_raw_params(key):
    ks = jax.random.split(key, 12)

    def norm(k, shape, scale):
        return jax.random.normal(k, shape, jnp.float32) * scale

    raw = {
        'w1':   norm(ks[0], (HID, FEAT), 1.0 / np.sqrt(FEAT)),
        'b1':   norm(ks[1], (HID,), 0.1),
        'w2':   norm(ks[2], (4 * LENGTH, HID), 1.0 / np.sqrt(HID)),
        'b2':   norm(ks[3], (4 * LENGTH,), 0.1),
        'ct1w': norm(ks[4], (CIN, C1, K), 1.0 / np.sqrt(CIN * K)),
        'ct1b': norm(ks[5], (C1,), 0.1),
        'ct2w': norm(ks[6], (C1, C1, K), 1.0 / np.sqrt(C1 * K)),
        'ct2b': norm(ks[7], (C1,), 0.1),
        'c3w':  norm(ks[8], (C1, C1, K), 1.0 / np.sqrt(C1 * K)),
        'c3b':  norm(ks[9], (C1,), 0.1),
        'c4w':  norm(ks[10], (DIM, C1, K), 1.0 / np.sqrt(C1 * K)),
        'c4b':  norm(ks[11], (DIM,), 0.1),
    }
    # BatchNorm1d: default-initialized affine + running stats (eval mode).
    for name, ch in (('bn1', HID), ('bn2', C1), ('bn3', C1)):
        raw[name + '_gamma'] = jnp.ones((ch,), jnp.float32)
        raw[name + '_beta'] = jnp.zeros((ch,), jnp.float32)
        raw[name + '_mean'] = jnp.zeros((ch,), jnp.float32)
        raw[name + '_var'] = jnp.ones((ch,), jnp.float32)
    return raw


def pack_kernel_params(raw):
    """Fold the affine structure into 3 block-Toeplitz matrices (f64 host math).

    Weights are returned in bf16 (padded to lane-friendly widths), biases in f32.
    """
    r = {k: np.asarray(v, np.float64) for k, v in raw.items()}
    L = LENGTH

    def bn_fold(name):
        s = r[name + '_gamma'] / np.sqrt(r[name + '_var'] + BN_EPS)
        t = r[name + '_beta'] - r[name + '_mean'] * s
        return s, t

    s1, t1 = bn_fold('bn1')
    s2, t2 = bn_fold('bn2')
    s3, t3 = bn_fold('bn3')

    # pre_net collapsed: Linear(32,64) -> BN -> LeakyReLU(slope 1.0 == id) -> Linear(64,4L)
    A_pre = (r['w1'].T * s1[None, :]) @ r['w2'].T          # (FEAT, 4L)
    c_pre = (r['b1'] * s1 + t1) @ r['w2'].T + r['b2']      # (4L,)

    # ConvTranspose1d(4,32,3) as block-Toeplitz, BN2 folded.
    # pre_net out index j = c*L + l (the .view(N,4,L));  y1 flat index m = t*C1 + o.
    T1 = np.zeros((4 * L, L1 * C1))
    for c in range(CIN):
        for l in range(L):
            for k in range(K):
                t = l + k
                T1[c * L + l, t * C1:(t + 1) * C1] += r['ct1w'][c, :, k]
    bT1 = np.tile(r['ct1b'], L1)
    s2f, t2f = np.tile(s2, L1), np.tile(t2, L1)
    T1 = T1 * s2f[None, :]
    bT1 = bT1 * s2f + t2f
    W1 = A_pre @ T1                                        # (32, 576)
    c1 = c_pre @ T1 + bT1                                  # (576,)

    # ConvTranspose1d(32,32,3) as block-Toeplitz, BN3 folded.  j = t*C1+c, m = u*C1+o.
    T2 = np.zeros((L1 * C1, L2 * C1))
    for t in range(L1):
        for k in range(K):
            u = t + k
            T2[t * C1:(t + 1) * C1, u * C1:(u + 1) * C1] += r['ct2w'][:, :, k]
    bT2 = np.tile(r['ct2b'], L2)
    s3f, t3f = np.tile(s3, L2), np.tile(t3, L2)
    W2 = T2 * s3f[None, :]                                 # (576, 640)
    c2 = bT2 * s3f + t3f                                   # (640,)

    # Conv1d(32,32,3) and Conv1d(32,dim,3) composed (no nonlinearity between).
    T3 = np.zeros((L2 * C1, L3 * C1))
    for v in range(L3):
        for k in range(K):
            u = v + k
            T3[u * C1:(u + 1) * C1, v * C1:(v + 1) * C1] += r['c3w'][:, :, k].T
    bT3 = np.tile(r['c3b'], L3)
    T4 = np.zeros((L3 * C1, LENGTH * DIM))
    for w in range(LENGTH):
        for k in range(K):
            v = w + k
            T4[v * C1:(v + 1) * C1, w * DIM:(w + 1) * DIM] += r['c4w'][:, :, k].T
    bT4 = np.tile(r['c4b'], LENGTH)
    W3 = T3 @ T4                                           # (640, 64)
    c3 = bT3 @ T4 + bT4                                    # (64,)   (flat m = l*DIM + d)

    # ---- pad to lane-friendly widths (zero padding keeps the math exact) ----
    W1p = np.zeros((FEAT, D1_PAD));  W1p[:, :D1] = W1
    c1p = np.zeros((D1_PAD,));       c1p[:D1] = c1
    W2p = np.zeros((D1_PAD, D2));    W2p[:D1, :] = W2       # padded rows are zero
    W3p = np.zeros((D2, DOUT_PAD));  W3p[:, :DOUT] = W3
    c3p = np.zeros((DOUT_PAD,));     c3p[:DOUT] = c3

    bf16 = lambda a: jnp.asarray(a, jnp.bfloat16)
    f32 = lambda a: jnp.asarray(a, jnp.float32)
    return dict(W1=bf16(W1p), c1=f32(c1p.reshape(1, -1)),
                W2=bf16(W2p), c2=f32(c2.reshape(1, -1)),
                W3=bf16(W3p), c3=f32(c3p.reshape(1, -1)))


# ------------------------------ numpy reference ------------------------------

def reference_forward(feat, raw):
    f = np.asarray(feat, np.float64)
    r = {k: np.asarray(v, np.float64) for k, v in raw.items()}

    def bn(x, name, axis):
        shp = [1] * x.ndim
        shp[axis] = -1
        g, b = r[name + '_gamma'].reshape(shp), r[name + '_beta'].reshape(shp)
        m, v = r[name + '_mean'].reshape(shp), r[name + '_var'].reshape(shp)
        return (x - m) / np.sqrt(v + BN_EPS) * g + b

    def leaky(x, s):
        return np.where(x >= 0, x, s * x)

    def convT(x, w, b):                     # x (N,Cin,L), w (Cin,Cout,K)
        N_, _, Lx = x.shape
        Kk = w.shape[2]
        y = np.zeros((N_, w.shape[1], Lx + Kk - 1))
        for k in range(Kk):
            y[:, :, k:k + Lx] += np.einsum('ncl,co->nol', x, w[:, :, k])
        return y + b[None, :, None]

    def conv(x, w, b):                      # x (N,Cin,L), w (Cout,Cin,K)
        N_, _, Lx = x.shape
        Kk = w.shape[2]
        Lo = Lx - Kk + 1
        y = np.zeros((N_, w.shape[0], Lo))
        for k in range(Kk):
            y += np.einsum('ncl,oc->nol', x[:, :, k:k + Lo], w[:, :, k])
        return y + b[None, :, None]

    h = f @ r['w1'].T + r['b1']
    h = leaky(bn(h, 'bn1', 1), 1.0)          # LeakyReLU(True) -> slope 1.0
    h = h @ r['w2'].T + r['b2']
    x = h.reshape(f.shape[0], 4, LENGTH)
    x = leaky(bn(convT(x, r['ct1w'], r['ct1b']), 'bn2', 1), 0.2)
    x = leaky(bn(convT(x, r['ct2w'], r['ct2b']), 'bn3', 1), 0.2)
    x = conv(x, r['c3w'], r['c3b'])
    x = conv(x, r['c4w'], r['c4b'])
    return np.transpose(x, (0, 2, 1))        # (N, L, dim)


if __name__ == "__main__":
    key = jax.random.PRNGKey(0)
    pkey, fkey = jax.random.split(key)
    raw = init_raw_params(pkey)
    packed = pack_kernel_params(raw)

    N = 2
    feat = jax.random.normal(fkey, (N, FEAT), jnp.float32)

    out = pose_decoder_conv(feat, packed)
    out = jax.block_until_ready(out)

    assert out.shape == (N, LENGTH, DIM), out.shape
    ref = reference_forward(np.asarray(feat), raw)
    err = np.max(np.abs(np.asarray(out, np.float64) - ref))
    assert np.isfinite(np.asarray(out)).all()
    # bf16 MXU inputs with f32 accumulation over a 3-matmul chain on O(1)
    # activations -> expected max-abs error ~1e-2; 5e-2 is the bf16 tolerance.
    assert err < 5e-2, f"max abs error {err}"
    print("KERNEL_OK")
</pallas_src>

<mosaic_0001>
module attributes {stable_mosaic.version = 11 : i64} {
  func.func @pose_decoder_kernel(%arg0: i32, %arg1: memref<2x32xbf16, #tpu.memory_space<vmem>>, %arg2: memref<32x640xbf16, #tpu.memory_space<vmem>>, %arg3: memref<1x640xf32, #tpu.memory_space<vmem>>, %arg4: memref<640x640xbf16, #tpu.memory_space<vmem>>, %arg5: memref<1x640xf32, #tpu.memory_space<vmem>>, %arg6: memref<640x128xbf16, #tpu.memory_space<vmem>>, %arg7: memref<1x128xf32, #tpu.memory_space<vmem>>, %arg8: memref<2x128xf32, #tpu.memory_space<vmem>>) attributes {dimension_semantics = [#tpu.dimension_semantics<parallel>], iteration_bounds = array<i64: 1>, scalar_prefetch = 0 : i64, scratch_operands = 0 : i64, tpu.core_type = #tpu.core_type<tc>, window_params = [{transform_indices = @transform_0, window_bounds = array<i64: 2, 32>}, {pipeline_mode = #tpu.pipeline_mode<synchronous>, transform_indices = @transform_1, window_bounds = array<i64: 32, 640>}, {pipeline_mode = #tpu.pipeline_mode<synchronous>, transform_indices = @transform_2, window_bounds = array<i64: 1, 640>}, {pipeline_mode = #tpu.pipeline_mode<synchronous>, transform_indices = @transform_3, window_bounds = array<i64: 640, 640>}, {pipeline_mode = #tpu.pipeline_mode<synchronous>, transform_indices = @transform_4, window_bounds = array<i64: 1, 640>}, {pipeline_mode = #tpu.pipeline_mode<synchronous>, transform_indices = @transform_5, window_bounds = array<i64: 640, 128>}, {pipeline_mode = #tpu.pipeline_mode<synchronous>, transform_indices = @transform_6, window_bounds = array<i64: 1, 128>}, {transform_indices = @transform_7, window_bounds = array<i64: 2, 128>}]} {
    %c0 = arith.constant 0 : index
    %c0_0 = arith.constant 0 : index
    %0 = vector.load %arg1[%c0, %c0_0] : memref<2x32xbf16, #tpu.memory_space<vmem>>, vector<2x32xbf16>
    %c0_1 = arith.constant 0 : index
    %c0_2 = arith.constant 0 : index
    %1 = vector.load %arg2[%c0_1, %c0_2] : memref<32x640xbf16, #tpu.memory_space<vmem>>, vector<32x640xbf16>
    %cst = arith.constant dense<0.000000e+00> : vector<2x640xf32>
    %2 = tpu.matmul %0, %1, %cst {dimension_numbers = #tpu.dot_dimension_numbers<[1], [0], [0], [1], [0, 0, 1, 1], [], []>} : vector<2x32xbf16>, vector<32x640xbf16>, vector<2x640xf32> -> vector<2x640xf32>
    %c0_3 = arith.constant 0 : index
    %c0_4 = arith.constant 0 : index
    %3 = vector.load %arg3[%c0_3, %c0_4] : memref<1x640xf32, #tpu.memory_space<vmem>>, vector<1x640xf32>
    %4 = vector.broadcast %3 : vector<1x640xf32> to vector<2x640xf32>
    %5 = arith.addf %2, %4 : vector<2x640xf32>
    %cst_5 = arith.constant 0.000000e+00 : f32
    %6 = vector.broadcast %cst_5 : f32 to vector<2x640xf32>
    %7 = arith.cmpf oge, %5, %6 : vector<2x640xf32>
    %cst_6 = arith.constant 2.000000e-01 : f32
    %8 = vector.broadcast %cst_6 : f32 to vector<2x640xf32>
    %9 = arith.mulf %8, %5 : vector<2x640xf32>
    %10 = arith.select %7, %5, %9 : vector<2x640xi1>, vector<2x640xf32>
    %11 = arith.truncf %10 : vector<2x640xf32> to vector<2x640xbf16>
    %c0_7 = arith.constant 0 : index
    %c0_8 = arith.constant 0 : index
    %12 = vector.load %arg4[%c0_7, %c0_8] : memref<640x640xbf16, #tpu.memory_space<vmem>>, vector<640x640xbf16>
    %cst_9 = arith.constant dense<0.000000e+00> : vector<2x640xf32>
    %13 = tpu.matmul %11, %12, %cst_9 {dimension_numbers = #tpu.dot_dimension_numbers<[1], [0], [0], [1], [0, 0, 1, 1], [], []>} : vector<2x640xbf16>, vector<640x640xbf16>, vector<2x640xf32> -> vector<2x640xf32>
    %c0_10 = arith.constant 0 : index
    %c0_11 = arith.constant 0 : index
    %14 = vector.load %arg5[%c0_10, %c0_11] : memref<1x640xf32, #tpu.memory_space<vmem>>, vector<1x640xf32>
    %15 = vector.broadcast %14 : vector<1x640xf32> to vector<2x640xf32>
    %16 = arith.addf %13, %15 : vector<2x640xf32>
    %cst_12 = arith.constant 0.000000e+00 : f32
    %17 = vector.broadcast %cst_12 : f32 to vector<2x640xf32>
    %18 = arith.cmpf oge, %16, %17 : vector<2x640xf32>
    %cst_13 = arith.constant 2.000000e-01 : f32
    %19 = vector.broadcast %cst_13 : f32 to vector<2x640xf32>
    %20 = arith.mulf %19, %16 : vector<2x640xf32>
    %21 = arith.select %18, %16, %20 : vector<2x640xi1>, vector<2x640xf32>
    %22 = arith.truncf %21 : vector<2x640xf32> to vector<2x640xbf16>
    %c0_14 = arith.constant 0 : index
    %c0_15 = arith.constant 0 : index
    %23 = vector.load %arg6[%c0_14, %c0_15] : memref<640x128xbf16, #tpu.memory_space<vmem>>, vector<640x128xbf16>
    %cst_16 = arith.constant dense<0.000000e+00> : vector<2x128xf32>
    %24 = tpu.matmul %22, %23, %cst_16 {dimension_numbers = #tpu.dot_dimension_numbers<[1], [0], [0], [1], [0, 0, 1, 1], [], []>} : vector<2x640xbf16>, vector<640x128xbf16>, vector<2x128xf32> -> vector<2x128xf32>
    %c0_17 = arith.constant 0 : index
    %c0_18 = arith.constant 0 : index
    %25 = vector.load %arg7[%c0_17, %c0_18] : memref<1x128xf32, #tpu.memory_space<vmem>>, vector<1x128xf32>
    %26 = vector.broadcast %25 : vector<1x128xf32> to vector<2x128xf32>
    %27 = arith.addf %24, %26 : vector<2x128xf32>
    %c0_19 = arith.constant 0 : index
    %c0_20 = arith.constant 0 : index
    %28 = vector.load %arg8[%c0_19, %c0_20] : memref<2x128xf32, #tpu.memory_space<vmem>>, vector<2x128xf32>
    tpu.vector_store %arg8[%c0_19, %c0_20], %27 {strides = array<i32>} : memref<2x128xf32, #tpu.memory_space<vmem>>, vector<2x128xf32>,
    return
  }
  func.func @transform_0(%arg0: i32) -> (i32, i32) {
    %c0_i32 = arith.constant 0 : i32
    %c0_i32_0 = arith.constant 0 : i32
    return %arg0, %c0_i32 : i32, i32
  }
  func.func @transform_1(%arg0: i32) -> (i32, i32) {
    %c0_i32 = arith.constant 0 : i32
    %c0_i32_0 = arith.constant 0 : i32
    %c0_i32_1 = arith.constant 0 : i32
    return %c0_i32, %c0_i32_0 : i32, i32
  }
  func.func @transform_2(%arg0: i32) -> (i32, i32) {
    %c0_i32 = arith.constant 0 : i32
    %c0_i32_0 = arith.constant 0 : i32
    %c0_i32_1 = arith.constant 0 : i32
    return %c0_i32, %c0_i32_0 : i32, i32
  }
  func.func @transform_3(%arg0: i32) -> (i32, i32) {
    %c0_i32 = arith.constant 0 : i32
    %c0_i32_0 = arith.constant 0 : i32
    %c0_i32_1 = arith.constant 0 : i32
    return %c0_i32, %c0_i32_0 : i32, i32
  }
  func.func @transform_4(%arg0: i32) -> (i32, i32) {
    %c0_i32 = arith.constant 0 : i32
    %c0_i32_0 = arith.constant 0 : i32
    %c0_i32_1 = arith.constant 0 : i32
    return %c0_i32, %c0_i32_0 : i32, i32
  }
  func.func @transform_5(%arg0: i32) -> (i32, i32) {
    %c0_i32 = arith.constant 0 : i32
    %c0_i32_0 = arith.constant 0 : i32
    %c0_i32_1 = arith.constant 0 : i32
    return %c0_i32, %c0_i32_0 : i32, i32
  }
  func.func @transform_6(%arg0: i32) -> (i32, i32) {
    %c0_i32 = arith.constant 0 : i32
    %c0_i32_0 = arith.constant 0 : i32
    %c0_i32_1 = arith.constant 0 : i32
    return %c0_i32, %c0_i32_0 : i32, i32
  }
  func.func @transform_7(%arg0: i32) -> (i32, i32) {
    %c0_i32 = arith.constant 0 : i32
    %c0_i32_0 = arith.constant 0 : i32
    return %arg0, %c0_i32 : i32, i32
  }
}

</mosaic_0001>

<bundles_post_ra>
// kernel: tpu_custom_call.1
= control target key start
LH: loop header
LB: loop body
LE: loop exit
PB: predicated region body
PF: predicated region fallthrough
CT: control target
= control target key end

     0   :  { %12 = vsyncpa [#allocation3], 0  ;;  %s3595_s0 = inlined_call_operand.hbm [shape: bf16[2,32], index: 0, kind: input, shape index: {}]   ;;  %s3596_s1 = inlined_call_operand.hbm [shape: bf16[32,640], index: 1, kind: input, shape index: {}]   ;;  %s3597_s2 = inlined_call_operand.vmem [shape: f32[1,640], index: 2, kind: input, shape index: {}]   ;;  %s3598_s3 = inlined_call_operand.hbm [shape: bf16[640,640], index: 3, kind: input, shape index: {}]   ;;  %s3599_s4 = inlined_call_operand.vmem [shape: f32[1,640], index: 4, kind: input, shape index: {}]   ;;  %s3600_s5 = inlined_call_operand.hbm [shape: bf16[640,128], index: 5, kind: input, shape index: {}]   ;;  %s3601_s6 = inlined_call_operand.vmem [shape: f32[1,128], index: 6, kind: input, shape index: {}]   ;;  %s3602_s7 = inlined_call_operand.hbm [shape: f32[2,128], index: 7, kind: output, shape index: {}]  }
   0x1   :  { %13 = vsyncpa [#allocation6], 0 }
   0x2   :  { %14 = vsyncpa [#allocation9], 0 }
   0x3   :  { %15 = vsyncpa [#allocation4], 0  ;;  %s3372_s24 = smov [#allocation5]   ;;  %s3254_s28 = scalar_lea.hbm %s3596_s1, 1280 }
   0x4   :  { %s31_s25 = sshll.u32 %s3372_s24, 4  ;;  %p3255_p0 = scmp.ne.s32.totalorder %s3596_s1, %s3254_s28  ;;  %s32_s25 = int_to_ptr.vmem [resolvable:$true] %s31_s25 }
   0x5   :  { %p3258_p1 = scmp.lt.u32.totalorder %s3254_s28, %s3596_s1 }
   0x7   :  { %p3260_p2 = pnand %p3258_p1, %p3255_p0 }
   0x9   :  { %3263 = shalt.err (!%p3260_p2)
}
   0xa   :  { %s3264_s10 = scalar_lea.vmem %s32_s25, 1280  ;;  %p3269_p4 = scmp.lt.s32.totalorder %s32_s25, %s32_s25 }
   0xb   :  { %p3265_p3 = scmp.ne.s32.totalorder %s32_s25, %s3264_s10  ;;  %p3270_p5 = scmp.lt.s32.totalorder %s3264_s10, %s3264_s10 }
   0xd   :  { %p3271_p6 = por %p3270_p5, %p3269_p4 }
   0xf   :  { %p3272_p7 = pnand %p3271_p6, %p3265_p3 }
  0x11   :  { %3275 = shalt.err (!%p3272_p7)
}
  0x12   :  { %s3373_s11 = smov 320   ;;  %s3374_s12 = smov 20  }
  0x13   :  { %37 = dma.hbm_to_vmem [thread:$0]  %s3596_s1, 1280, %s32_s25, [#allocation6], %s3373_s11, %s3373_s11, %s3374_s12  }
  0x14   :  { %s3375_s15 = smov [#allocation2]   ;;  %s3376_s17 = smov [#allocation7]  }
  0x15   :  { %s22_s16 = sshll.u32 %s3375_s15, 4  ;;  %s45_s18 = sshll.u32 %s3376_s17, 4  ;;  %s23_s16 = int_to_ptr.vmem [resolvable:$true] %s22_s16  ;;  %s46_s18 = int_to_ptr.vmem [resolvable:$true] %s45_s18 }
  0x16   :  { %s3276_s21 = scalar_lea.hbm %s3595_s0, 16 }
  0x17   :  { %p3277_p8 = scmp.ne.s32.totalorder %s3595_s0, %s3276_s21  ;;  %p3280_p9 = scmp.lt.u32.totalorder %s3276_s21, %s3595_s0 }
  0x19   :  { %p3282_p10 = pnand %p3280_p9, %p3277_p8 }
  0x1b   :  { %3285 = shalt.err (!%p3282_p10)
}
  0x1c   :  { %s3286_s1 = scalar_lea.vmem %s23_s16, 16  ;;  %s3290_s25 = scalar_lea.vmem %s23_s16, 32 }
  0x1d   :  { %p3287_p11 = scmp.ne.s32.totalorder %s23_s16, %s3286_s1  ;;  %p3291_p12 = scmp.lt.s32.totalorder %s23_s16, %s23_s16 }
  0x1e   :  { %p3292_p13 = scmp.lt.s32.totalorder %s3290_s25, %s3286_s1 }
  0x20   :  { %p3293_p0 = por %p3292_p13, %p3291_p12 }
  0x22   :  { %p3294_p1 = pnand %p3293_p0, %p3287_p11 }
  0x24   :  { %3297 = shalt.err (!%p3294_p1)
}
  0x25   :  { %25 = dma.hbm_to_vmem [thread:$0]  %s3595_s0, 16, %s23_s16, [#allocation3]  }
  0x26   :  { %s3298_s8 = scalar_lea.hbm %s3598_s3, 25600 }
  0x27   :  { %p3299_p2 = scmp.ne.s32.totalorder %s3598_s3, %s3298_s8  ;;  %p3302_p3 = scmp.lt.u32.totalorder %s3298_s8, %s3598_s3 }
  0x29   :  { %p3304_p4 = pnand %p3302_p3, %p3299_p2 }
  0x2b   :  { %3307 = shalt.err (!%p3304_p4)
}
  0x2c   :  { %s3308_s15 = scalar_lea.vmem %s46_s18, 25600  ;;  %p3313_p6 = scmp.lt.s32.totalorder %s46_s18, %s46_s18 }
  0x2d   :  { %p3309_p5 = scmp.ne.s32.totalorder %s46_s18, %s3308_s15  ;;  %p3314_p7 = scmp.lt.s32.totalorder %s3308_s15, %s3308_s15 }
  0x2f   :  { %p3315_p8 = por %p3314_p7, %p3313_p6 }
  0x31   :  { %p3316_p9 = pnand %p3315_p8, %p3309_p5 }
  0x33   :  { %3319 = shalt.err (!%p3316_p9)
}
  0x34   :  { %51 = dma.hbm_to_vmem [thread:$0]  %s3598_s3, 25600, %s46_s18, [#allocation6], %s3373_s11, %s3373_s11, %s3374_s12  }
  0x35   :  { %s3377_s17 = smov [#allocation8]   ;;  %s3320_s22 = scalar_lea.hbm %s3600_s5, 5120 }
  0x36   :  { %s59_s19 = sshll.u32 %s3377_s17, 4  ;;  %p3321_p10 = scmp.ne.s32.totalorder %s3600_s5, %s3320_s22  ;;  %s60_s19 = int_to_ptr.vmem [resolvable:$true] %s59_s19 }
  0x37   :  { %p3324_p11 = scmp.lt.u32.totalorder %s3320_s22, %s3600_s5 }
  0x39   :  { %p3326_p12 = pnand %p3324_p11, %p3321_p10 }
  0x3b   :  { %3329 = shalt.err (!%p3326_p12)
}
  0x3c   :  { %s3330_s25 = scalar_lea.vmem %s60_s19, 5120  ;;  %p3335_p0 = scmp.lt.s32.totalorder %s60_s19, %s60_s19 }
  0x3d   :  { %p3331_p13 = scmp.ne.s32.totalorder %s60_s19, %s3330_s25  ;;  %p3336_p1 = scmp.lt.s32.totalorder %s3330_s25, %s3330_s25 }
  0x3f   :  { %p3337_p2 = por %p3336_p1, %p3335_p0 }
  0x41   :  { %p3338_p3 = pnand %p3337_p2, %p3331_p13 }
  0x43   :  { %3341 = shalt.err (!%p3338_p3)
}
  0x44   :  { %s3378_s3 = smov 64   ;;  %s3379_s11 = smov 4  }
  0x45   :  { %65 = dma.hbm_to_vmem [thread:$0]  %s3600_s5, 5120, %s60_s19, [#allocation9], %s3378_s3, %s3378_s3, %s3379_s11  }
  0x46   :  { %3364 = dma.done.wait [#allocation3], 16  }
  0x47   :  { %3365 = vsyncadd [#allocation3], 4294967280 }
  0x48   :  { %3366 = dma.done.wait [#allocation6], 26880  }
  0x49   :  { %3367 = vsyncadd [#allocation6], 4294940416 }
  0x4a   :  { %3368 = dma.done.wait [#allocation9], 5120  }
  0x4b   :  { %3369 = vsyncadd [#allocation9], 4294962176  ;;  %v3380_v0 = vmov 0   ;;  %v2920_v1 = vld [vmem:[#allocation5 + $0x4] ss:$20 sps:$4 sm:$0xff]   ;;  %vm173_vm0 = vcmask 261120  }
  0x4c   :  { %209 = vmatprep.mubr.bf16.mxu0 %v3380_v0  ;;  %250 = vmatprep.mubr.bf16.mxu1 %v3380_v0  ;;  %v2922_v2 = vld [vmem:[#allocation5] ss:$20 sps:$4 sm:$0xff]   ;;  %v2925_v4 = vld [vmem:[#allocation5 + $0x28] ss:$20 sps:$4 sm:$0xff]   ;;  %v2931_v9 = vld [vmem:[#allocation5 + $0x30] ss:$20 sps:$4 sm:$0xff]  }
  0x4d   :  { %177 = vmatprep.subr.bf16.mxu0 %v2920_v1  ;;  %v2923_v3 = vld [vmem:[#allocation5 + $0x2c] ss:$20 sps:$4 sm:$0xff]   ;;  %v2928_v6 = vld [vmem:[#allocation5 + $0x8] ss:$20 sps:$4 sm:$0xff]   ;;  %v2932_v10 = vld [vmem:[#allocation5 + $0x10] ss:$20 sps:$4 sm:$0xff]  }
  0x4e   :  { %178 = vmatpush1.bf16.msra.mxu0 %v2922_v2  ;;  %v2926_v5 = vld [vmem:[#allocation5 + $0xc] ss:$20 sps:$4 sm:$0xff]   ;;  %v81_v7 = vld [vmem:[#allocation2] sm:$0x1]  ;;  %v2929_v8 = vld [vmem:[#allocation5 + $0x34] ss:$20 sps:$4 sm:$0xff]  }
  0x4f   :  { %179 = vmatprep.subr.bf16.mxu0 %v2923_v3  ;;  %218 = vmatprep.subr.bf16.mxu1 %v2926_v5  ;;  %v3381_v11 = vmov 0.0   ;;  %v2936_v12 = vld [vmem:[#allocation7 + $0x4] ss:$20 sps:$4 sm:$0xff]   ;;  %v2934_v13 = vld [vmem:[#allocation7] ss:$20 sps:$4 sm:$0xff]   ;;  %vm3382_vm1 = vmmov 0  }
  0x50   :  { %219 = vmatpush1.bf16.msra.mxu1 %v2928_v6  ;;  %v2933_v14 = vld [vmem:[#allocation5 + $0x38] ss:$20 sps:$4 sm:$0xff]   ;;  %v2942_v15 = vld [vmem:[#allocation7 + $0x2c] ss:$20 sps:$4 sm:$0xff]   ;;  %v2946_v21 = vld [vmem:[#allocation7 + $0x50] ss:$20 sps:$4 sm:$0xff]  }
  0x51   :  { %220 = vmatprep.subr.bf16.mxu1 %v2929_v8  ;;  %v2939_v16 = vld [vmem:[#allocation7 + $0xc] ss:$20 sps:$4 sm:$0xff]   ;;  %v2940_v17 = vld [vmem:[#allocation7 + $0x28] ss:$20 sps:$4 sm:$0xff]   ;;  %v2943_v22 = vld [vmem:[#allocation7 + $0x30] ss:$20 sps:$4 sm:$0xff]  }
  0x52   :  { %180 = vmatpush1.bf16.msra.mxu0 %v2925_v4  ;;  %v2937_v18 = vld [vmem:[#allocation7 + $0x8] ss:$20 sps:$4 sm:$0xff]   ;;  %v2952_v25 = vld [vmem:[#allocation7 + $0x78] ss:$20 sps:$4 sm:$0xff]   ;;  %v2958_v29 = vld [vmem:[#allocation7 + $0xa0] ss:$20 sps:$4 sm:$0xff]  }
  0x53   :  { %2840 = vmatprep.subr.bf16.mxu0 %v3381_v11  ;;  %v2948_v19 = vld [vmem:[#allocation7 + $0x54] ss:$20 sps:$4 sm:$0xff]   ;;  %v2954_v23 = vld [vmem:[#allocation7 + $0x7c] ss:$20 sps:$4 sm:$0xff]   ;;  %v2949_v26 = vld [vmem:[#allocation7 + $0x58] ss:$20 sps:$4 sm:$0xff]  }
  0x54   :  { %221 = vmatpush1.bf16.msra.mxu1 %v2931_v9  ;;  %v2945_v20 = vld [vmem:[#allocation7 + $0x34] ss:$20 sps:$4 sm:$0xff]   ;;  %v2951_v24 = vld [vmem:[#allocation7 + $0x5c] ss:$20 sps:$4 sm:$0xff]   ;;  %v2960_v27 = vld [vmem:[#allocation7 + $0xa4] ss:$20 sps:$4 sm:$0xff]  }
  0x55   :  { %2487 = vmatmul.mubr.msk.bf16.vlgmr.msra.gmra.mrb[0].mxu0 %vm173_vm0, %v81_v7  ;;  %1626 = vmatprep.subr.bf16.mxu1 %v2936_v12  ;;  %v2957_v28 = vld [vmem:[#allocation7 + $0x84] ss:$20 sps:$4 sm:$0xff]   ;;  %v2955_v30 = vld [vmem:[#allocation7 + $0x80] ss:$20 sps:$4 sm:$0xff]   ;;  %v2964_v33 = vld [vmem:[#allocation7 + $0xc8] ss:$20 sps:$4 sm:$0xff]  }
  0x56   :  { %2841 = vmatpush3.bf16.msra.mxu0 %v2932_v10  ;;  %2844 = vmatprep.mubr.msk.bf16.mxu0 %vm3382_vm1, %v3381_v11  ;;  %v2966_v31 = vld [vmem:[#allocation7 + $0xcc] ss:$20 sps:$4 sm:$0xff]   ;;  %v2961_v34 = vld [vmem:[#allocation7 + $0xa8] ss:$20 sps:$4 sm:$0xff]   ;;  %v2970_v37 = vld [vmem:[#allocation7 + $0xf0] ss:$20 sps:$4 sm:$0xff]  }
  0x57   :  { %2842 = vmatprep.subr.bf16.mxu0 %v3381_v11  ;;  %2488 = vmatmul.mubr.msk.bf16.vlgmr.msra.gmra.mrb[0].mxu1 %vm173_vm0, %v81_v7  ;;  %v2963_v32 = vld [vmem:[#allocation7 + $0xac] ss:$20 sps:$4 sm:$0xff]   ;;  %v2972_v35 = vld [vmem:[#allocation7 + $0xf4] ss:$20 sps:$4 sm:$0xff]   ;;  %v2967_v38 = vld [vmem:[#allocation7 + $0xd0] ss:$20 sps:$4 sm:$0xff]  }
  0x58   :  { %1627 = vmatpush1.bf16.msra.mxu1 %v2934_v13  ;;  %v2969_v36 = vld [vmem:[#allocation7 + $0xd4] ss:$20 sps:$4 sm:$0xff]   ;;  %v2978_v39 = vld [vmem:[#allocation7 + $0x11c] ss:$20 sps:$4 sm:$0xff]   ;;  %v2976_v41 = vld [vmem:[#allocation7 + $0x118] ss:$20 sps:$4 sm:$0xff]  }
  0x59   :  { %1628 = vmatprep.subr.bf16.mxu1 %v2942_v15  ;;  %v2975_v40 = vld [vmem:[#allocation7 + $0xfc] ss:$20 sps:$4 sm:$0xff]   ;;  %v2973_v42 = vld [vmem:[#allocation7 + $0xf8] ss:$20 sps:$4 sm:$0xff]   ;;  %v2982_v45 = vld [vmem:[#allocation7 + $0x140] ss:$20 sps:$4 sm:$0xff]  }
  0x5a   :  { %2843 = vmatpush3.bf16.msra.mxu0 %v2933_v14  ;;  %v2984_v43 = vld [vmem:[#allocation7 + $0x144] ss:$20 sps:$4 sm:$0xff]   ;;  %v2979_v46 = vld [vmem:[#allocation7 + $0x120] ss:$20 sps:$4 sm:$0xff]   ;;  %v2988_v49 = vld [vmem:[#allocation7 + $0x168] ss:$20 sps:$4 sm:$0xff]  }
  0x5b   :  { %1749 = vmatprep.subr.bf16.mxu0 %v2939_v16  ;;  %v2981_v44 = vld [vmem:[#allocation7 + $0x124] ss:$20 sps:$4 sm:$0xff]   ;;  %v2990_v47 = vld [vmem:[#allocation7 + $0x16c] ss:$20 sps:$4 sm:$0xff]   ;;  %v2985_v50 = vld [vmem:[#allocation7 + $0x148] ss:$20 sps:$4 sm:$0xff]  }
  0x5c   :  { %1629 = vmatpush1.bf16.msra.mxu1 %v2940_v17  ;;  %v2987_v48 = vld [vmem:[#allocation7 + $0x14c] ss:$20 sps:$4 sm:$0xff]   ;;  %v2996_v51 = vld [vmem:[#allocation7 + $0x194] ss:$20 sps:$4 sm:$0xff]   ;;  %v2994_v53 = vld [vmem:[#allocation7 + $0x190] ss:$20 sps:$4 sm:$0xff]   ;;  %v96_v17 = vlaneseq }
  0x5d   :  { %2845 = vmatmul.mubr.msk.bf16.vlgmr.msra.gmra.mrb[4].mxu0 %vm173_vm0, %v81_v7  ;;  %1630 = vmatprep.subr.bf16.mxu1 %v2948_v19  ;;  %v2993_v52 = vld [vmem:[#allocation7 + $0x174] ss:$20 sps:$4 sm:$0xff]   ;;  %v2991_v54 = vld [vmem:[#allocation7 + $0x170] ss:$20 sps:$4 sm:$0xff]   ;;  %v3000_v57 = vld [vmem:[#allocation7 + $0x1b8] ss:$20 sps:$4 sm:$0xff]  }
  0x5e   :  { %1750 = vmatpush1.bf16.msra.mxu0 %v2937_v18  ;;  %v3002_v55 = vld [vmem:[#allocation7 + $0x1bc] ss:$20 sps:$4 sm:$0xff]   ;;  %v2997_v58 = vld [vmem:[#allocation7 + $0x198] ss:$20 sps:$4 sm:$0xff]   ;;  %v3006_v61 = vld [vmem:[#allocation7 + $0x1e0] ss:$20 sps:$4 sm:$0xff]  }
  0x5f   :  { %1751 = vmatprep.subr.bf16.mxu0 %v2945_v20  ;;  %v2999_v56 = vld [vmem:[#allocation7 + $0x19c] ss:$20 sps:$4 sm:$0xff]   ;;  %v3008_v59 = vld [vmem:[#allocation7 + $0x1e4] ss:$20 sps:$4 sm:$0xff]   ;;  %v3003_v62 = vld [vmem:[#allocation7 + $0x1c0] ss:$20 sps:$4 sm:$0xff]  }
  0x60   :  { %1631 = vmatpush1.bf16.msra.mxu1 %v2946_v21  ;;  %v3005_v60 = vld [vmem:[#allocation7 + $0x1c4] ss:$20 sps:$4 sm:$0xff]   ;;  %v3014_v63 = vld [vmem:[#allocation7 + $0x20c] ss:$20 sps:$4 sm:$0xff]   ;;  %v3012_v2 = vld [vmem:[#allocation7 + $0x208] ss:$20 sps:$4 sm:$0xff]  }
  0x61   :  { %1632 = vmatprep.subr.bf16.mxu1 %v2954_v23  ;;  %v3011_v1 = vld [vmem:[#allocation7 + $0x1ec] ss:$20 sps:$4 sm:$0xff]   ;;  %v3009_v3 = vld [vmem:[#allocation7 + $0x1e8] ss:$20 sps:$4 sm:$0xff]   ;;  %v3015_v5 = vld [vmem:[#allocation7 + $0x210] ss:$20 sps:$4 sm:$0xff]  }
  0x62   :  { %1752 = vmatpush1.bf16.msra.mxu0 %v2943_v22  ;;  %v3017_v4 = vld [vmem:[#allocation7 + $0x214] ss:$20 sps:$4 sm:$0xff]   ;;  %v3023_v7 = vld [vmem:[#allocation7 + $0x23c] ss:$20 sps:$4 sm:$0xff]   ;;  %v3021_v9 = vld [vmem:[#allocation7 + $0x238] ss:$20 sps:$4 sm:$0xff]  }
  0x63   :  { %1753 = vmatprep.subr.bf16.mxu0 %v2951_v24  ;;  %v3020_v6 = vld [vmem:[#allocation7 + $0x234] ss:$20 sps:$4 sm:$0xff]   ;;  %v3018_v8 = vld [vmem:[#allocation7 + $0x230] ss:$20 sps:$4 sm:$0xff]   ;;  %v3024_v13 = vld [vmem:[#allocation7 + $0x258] ss:$20 sps:$4 sm:$0xff]  }
  0x64   :  { %1633 = vmatpush1.bf16.msra.mxu1 %v2952_v25  ;;  %v3026_v10 = vld [vmem:[#allocation7 + $0x25c] ss:$20 sps:$4 sm:$0xff]   ;;  %v3029_v12 = vld [vmem:[#allocation7 + $0x264] ss:$20 sps:$4 sm:$0xff]   ;;  %v3027_v14 = vld [vmem:[#allocation7 + $0x260] ss:$20 sps:$4 sm:$0xff]  }
  0x65   :  { %1634 = vmatprep.subr.bf16.mxu1 %v2960_v27  ;;  %v3032_v15 = vld [vmem:[#allocation7 + $0x284] ss:$20 sps:$4 sm:$0xff]   ;;  %v3035_v16 = vld [vmem:[#allocation7 + $0x28c] ss:$20 sps:$4 sm:$0xff]   ;;  %v3487_v18 = vshrl.u32 %v96_v17, 7  ;;  %s3383_s30 = smov [#allocation10]  }
  0x66   :  { %1754 = vmatpush1.bf16.msra.mxu0 %v2949_v26  ;;  %v3493_v20 = vld [vmem:[%s3597_s2] sm:$0x1f]  ;;  %s2466_s8 = sshll.u32 %s3383_s30, 4  ;;  %s2467_s8 = int_to_ptr.vmem [resolvable:$true] %s2466_s8 }
  0x67   :  { %1755 = vmatprep.subr.bf16.mxu0 %v2957_v28  ;;  %v98_v19 = vsub.s32 0, %v3487_v18  ;;  %v102_v21 = vsub.s32 1, %v3487_v18  ;;  %v110_v23 = vsub.s32 3, %v3487_v18  ;;  %v3075_v17 = vld [vmem:[#allocation7 + $0x3a0] ss:$20 sps:$4 sm:$0xff]   ;;  %p3347_p5 = scmp.lt.s32.totalorder %s2467_s8, %s2467_s8 }
  0x68   :  { %1635 = vmatpush1.bf16.msra.mxu1 %v2958_v29 }
  0x69   :  { %1636 = vmatprep.subr.bf16.mxu1 %v2966_v31  ;;  %v99_v22 = vrot.slane %v3493_v20, %v98_v19  ;;  %v103_v24 = vrot.slane %v3493_v20, %v102_v21  ;;  %v111_v28 = vrot.slane %v3493_v20, %v110_v23 }
  0x6a   :  { %1756 = vmatpush1.bf16.msra.mxu0 %v2955_v30 }
  0x6b   :  { %1757 = vmatprep.subr.bf16.mxu0 %v2963_v32 }
  0x6c   :  { %1637 = vmatpush1.bf16.msra.mxu1 %v2964_v33 }
  0x6d   :  { %1638 = vmatprep.subr.bf16.mxu1 %v2972_v35 }
  0x6e   :  { %1758 = vmatpush1.bf16.msra.mxu0 %v2961_v34 }
  0x6f   :  { %1759 = vmatprep.subr.bf16.mxu0 %v2969_v36 }
  0x70   :  { %1639 = vmatpush1.bf16.msra.mxu1 %v2970_v37 }
  0x71   :  { %1640 = vmatprep.subr.bf16.mxu1 %v2978_v39 }
  0x72   :  { %1760 = vmatpush1.bf16.msra.mxu0 %v2967_v38 }
  0x73   :  { %1761 = vmatprep.subr.bf16.mxu0 %v2975_v40  ;;  %v3030_v40 = vld [vmem:[#allocation7 + $0x280] ss:$20 sps:$4 sm:$0xff]  }
  0x74   :  { %1641 = vmatpush1.bf16.msra.mxu1 %v2976_v41 }
  0x75   :  { %1642 = vmatprep.subr.bf16.mxu1 %v2984_v43  ;;  %v3033_v43 = vld [vmem:[#allocation7 + $0x288] ss:$20 sps:$4 sm:$0xff]  }
  0x76   :  { %1762 = vmatpush1.bf16.msra.mxu0 %v2973_v42 }
  0x77   :  { %1763 = vmatprep.subr.bf16.mxu0 %v2981_v44 }
  0x78   :  { %1643 = vmatpush1.bf16.msra.mxu1 %v2982_v45 }
  0x79   :  { %1644 = vmatprep.subr.bf16.mxu1 %v2990_v47  ;;  %v3041_v47 = vld [vmem:[#allocation7 + $0x2b4] ss:$20 sps:$4 sm:$0xff]  }
  0x7a   :  { %1764 = vmatpush1.bf16.msra.mxu0 %v2979_v46  ;;  %v3038_v46 = vld [vmem:[#allocation7 + $0x2ac] ss:$20 sps:$4 sm:$0xff]  }
  0x7b   :  { %1765 = vmatprep.subr.bf16.mxu0 %v2987_v48 }
  0x7c   :  { %1645 = vmatpush1.bf16.msra.mxu1 %v2988_v49 }
  0x7d   :  { %1646 = vmatprep.subr.bf16.mxu1 %v2996_v51 }
  0x7e   :  { %1766 = vmatpush1.bf16.msra.mxu0 %v2985_v50 }
  0x7f   :  { %1767 = vmatprep.subr.bf16.mxu0 %v2993_v52 }
  0x80   :  { %1647 = vmatpush1.bf16.msra.mxu1 %v2994_v53  ;;  %v3036_v53 = vld [vmem:[#allocation7 + $0x2a8] ss:$20 sps:$4 sm:$0xff]  }
  0x81   :  { %1648 = vmatprep.subr.bf16.mxu1 %v3002_v55 }
  0x82   :  { %1768 = vmatpush1.bf16.msra.mxu0 %v2991_v54  ;;  %v3039_v54 = vld [vmem:[#allocation7 + $0x2b0] ss:$20 sps:$4 sm:$0xff]  }
  0x83   :  { %1769 = vmatprep.subr.bf16.mxu0 %v2999_v56  ;;  %v3044_v56 = vld [vmem:[#allocation7 + $0x2d4] ss:$20 sps:$4 sm:$0xff]  }
  0x84   :  { %1649 = vmatpush1.bf16.msra.mxu1 %v3000_v57  ;;  %v3047_v57 = vld [vmem:[#allocation7 + $0x2dc] ss:$20 sps:$4 sm:$0xff]  }
  0x85   :  { %1650 = vmatprep.subr.bf16.mxu1 %v3008_v59  ;;  %v3045_v59 = vld [vmem:[#allocation7 + $0x2d8] ss:$20 sps:$4 sm:$0xff]  }
  0x86   :  { %1770 = vmatpush1.bf16.msra.mxu0 %v2997_v58  ;;  %v3042_v58 = vld [vmem:[#allocation7 + $0x2d0] ss:$20 sps:$4 sm:$0xff]  }
  0x87   :  { %1771 = vmatprep.subr.bf16.mxu0 %v3005_v60  ;;  %v3050_v60 = vld [vmem:[#allocation7 + $0x2fc] ss:$20 sps:$4 sm:$0xff]  }
  0x88   :  { %1651 = vmatpush1.bf16.msra.mxu1 %v3006_v61  ;;  %v3053_v61 = vld [vmem:[#allocation7 + $0x304] ss:$20 sps:$4 sm:$0xff]  }
  0x89   :  { %1652 = vmatprep.subr.bf16.mxu1 %v3014_v63  ;;  %v3051_v63 = vld [vmem:[#allocation7 + $0x300] ss:$20 sps:$4 sm:$0xff]  }
  0x8a   :  { %1772 = vmatpush1.bf16.msra.mxu0 %v3003_v62  ;;  %v3048_v62 = vld [vmem:[#allocation7 + $0x2f8] ss:$20 sps:$4 sm:$0xff]  }
  0x8b   :  { %1773 = vmatprep.subr.bf16.mxu0 %v3011_v1  ;;  %v3056_v1 = vld [vmem:[#allocation7 + $0x324] ss:$20 sps:$4 sm:$0xff]  }
  0x8c   :  { %1653 = vmatpush1.bf16.msra.mxu1 %v3012_v2  ;;  %v3059_v2 = vld [vmem:[#allocation7 + $0x32c] ss:$20 sps:$4 sm:$0xff]  }
  0x8d   :  { %1654 = vmatprep.subr.bf16.mxu1 %v3020_v6  ;;  %v3065_v6 = vld [vmem:[#allocation7 + $0x354] ss:$20 sps:$4 sm:$0xff]  }
  0x8e   :  { %1774 = vmatpush1.bf16.msra.mxu0 %v3009_v3  ;;  %v3054_v3 = vld [vmem:[#allocation7 + $0x320] ss:$20 sps:$4 sm:$0xff]  }
  0x8f   :  { %1775 = vmatprep.subr.bf16.mxu0 %v3017_v4  ;;  %v3057_v4 = vld [vmem:[#allocation7 + $0x328] ss:$20 sps:$4 sm:$0xff]  }
  0x90   :  { %1655 = vmatpush1.bf16.msra.mxu1 %v3018_v8  ;;  %v3063_v8 = vld [vmem:[#allocation7 + $0x350] ss:$20 sps:$4 sm:$0xff]  }
  0x91   :  { %1656 = vmatprep.subr.bf16.mxu1 %v3026_v10  ;;  %v3071_v10 = vld [vmem:[#allocation7 + $0x37c] ss:$20 sps:$4 sm:$0xff]  }
  0x92   :  { %1776 = vmatpush1.bf16.msra.mxu0 %v3015_v5  ;;  %v3062_v5 = vld [vmem:[#allocation7 + $0x34c] ss:$20 sps:$4 sm:$0xff]  }
  0x93   :  { %1777 = vmatprep.subr.bf16.mxu0 %v3023_v7  ;;  %v3060_v7 = vld [vmem:[#allocation7 + $0x348] ss:$20 sps:$4 sm:$0xff]  }
  0x94   :  { %1657 = vmatpush1.bf16.msra.mxu1 %v3024_v13  ;;  %v3069_v13 = vld [vmem:[#allocation7 + $0x378] ss:$20 sps:$4 sm:$0xff]  }
  0x95   :  { %1667 = vmatprep.subr.bf16.mxu1 %v3032_v15  ;;  %v3077_v15 = vld [vmem:[#allocation7 + $0x3a4] ss:$20 sps:$4 sm:$0xff]  }
  0x96   :  { %1778 = vmatpush1.bf16.msra.mxu0 %v3021_v9  ;;  %v3068_v9 = vld [vmem:[#allocation7 + $0x374] ss:$20 sps:$4 sm:$0xff]  }
  0x97   :  { %1779 = vmatprep.subr.bf16.mxu0 %v3029_v12  ;;  %v3066_v12 = vld [vmem:[#allocation7 + $0x370] ss:$20 sps:$4 sm:$0xff]  }
  0x9a   :  { %1780 = vmatpush1.bf16.msra.mxu0 %v3027_v14  ;;  %v3074_v14 = vld [vmem:[#allocation7 + $0x39c] ss:$20 sps:$4 sm:$0xff]  }
  0x9b   :  { %1790 = vmatprep.subr.bf16.mxu0 %v3035_v16  ;;  %v3072_v16 = vld [vmem:[#allocation7 + $0x398] ss:$20 sps:$4 sm:$0xff]  }
 0x128   :  { %v211_v25 = vpop.f32.mrb[0].mxu0 }
 0x129   :  { %v212_v26 = vadd.f32 %v211_v25, %v99_v22  ;;  %v213_v27 = vpop.f32.mrb[1].mxu0  ;;  %v3080_v22 = vld [vmem:[#allocation7 + $0x3c4] ss:$20 sps:$4 sm:$0xff]   ;;  %v3078_v25 = vld [vmem:[#allocation7 + $0x3c0] ss:$20 sps:$4 sm:$0xff]  }
 0x12a   :  { %v214_v29 = vadd.f32 %v213_v27, %v103_v24  ;;  %v215_v30 = vpop.f32.mrb[2].mxu0  ;;  %v3506_v33 = vpop.f32.mrb[0].mxu1  ;;  %v3083_v24 = vld [vmem:[#allocation7 + $0x3cc] ss:$20 sps:$4 sm:$0xff]  }
 0x12b   :  { %vm299_vm2 = vcmp.ge.f32.partialorder %v212_v26, 0.0  ;;  %v304_v31 = vmul.f32 0.2, %v212_v26  ;;  %v216_v32 = vpop.f32.mrb[3].mxu0  ;;  %v254_v35 = vpop.f32.mrb[1].mxu1 }
 0x12c   :  { %vm300_vm3 = vcmp.ge.f32.partialorder %v214_v29, 0.0  ;;  %v305_v34 = vmul.f32 0.2, %v214_v29  ;;  %v255_v37 = vadd.f32 %v254_v35, %v111_v28  ;;  %v256_v38 = vpop.f32.mrb[2].mxu1  ;;  %v3086_v27 = vld [vmem:[#allocation7 + $0x3ec] ss:$20 sps:$4 sm:$0xff]  }
 0x12d   :  { %v309_v36 = vsel %vm299_vm2, %v212_v26, %v304_v31  ;;  %v257_v41 = vpop.f32.mrb[3].mxu1  ;;  %v3081_v26 = vld [vmem:[#allocation7 + $0x3c8] ss:$20 sps:$4 sm:$0xff]   ;;  %v3087_v30 = vld [vmem:[#allocation7 + $0x3f0] ss:$20 sps:$4 sm:$0xff]  }
 0x12e   :  { %v310_v39 = vsel %vm300_vm3, %v214_v29, %v305_v34  ;;  %vm302_vm4 = vcmp.ge.f32.partialorder %v255_v37, 0.0  ;;  %v307_v44 = vmul.f32 0.2, %v255_v37  ;;  %v3510_v45 = vpack.c.bf16 %v309_v36, %v309_v36  ;;  %v3089_v28 = vld [vmem:[#allocation7 + $0x3f4] ss:$20 sps:$4 sm:$0xff]  }
 0x12f   :  { %v3508_v42 = vpack.c.bf16 %v310_v39, %v310_v39  ;;  %v3084_v29 = vld [vmem:[#allocation7 + $0x3e8] ss:$20 sps:$4 sm:$0xff]   ;;  %v3090_v34 = vld [vmem:[#allocation7 + $0x410] ss:$20 sps:$4 sm:$0xff]   ;;  %v3093_v35 = vld [vmem:[#allocation7 + $0x418] ss:$20 sps:$4 sm:$0xff]  }
 0x130   :  { %v3512_v48 = vpop.f32.mrb[4].mxu0  ;;  %v312_v49 = vsel %vm302_vm4, %v255_v37, %v307_v44  ;;  %v3092_v31 = vld [vmem:[#allocation7 + $0x414] ss:$20 sps:$4 sm:$0xff]   ;;  %v3095_v32 = vld [vmem:[#allocation7 + $0x41c] ss:$20 sps:$4 sm:$0xff]  }
 0x131   :  { %1658 = vmatprep.mubr.bf16.mxu1 %v3508_v42  ;;  %1781 = vmatprep.mubr.bf16.mxu0 %v3508_v42  ;;  %v2846_v50 = vpop.f32.mrb[5].mxu0  ;;  %v3518_v51 = vpack.c.bf16 %v312_v49, %v312_v49  ;;  %v3098_v36 = vld [vmem:[#allocation7 + $0x43c] ss:$20 sps:$4 sm:$0xff]   ;;  %v3101_v37 = vld [vmem:[#allocation7 + $0x444] ss:$20 sps:$4 sm:$0xff]  }
 0x132   :  { %1659 = vmatmul.mubr.bf16.vlgmr.msra.gmra.mrb[4].mxu1 %v3510_v45  ;;  %1782 = vmatmul.mubr.bf16.vlgmr.msra.gmra.mrb[8].mxu0 %v3510_v45  ;;  %v296_v52 = vpop.f32.mrb[6].mxu0  ;;  %v3096_v38 = vld [vmem:[#allocation7 + $0x438] ss:$20 sps:$4 sm:$0xff]   ;;  %v3099_v39 = vld [vmem:[#allocation7 + $0x440] ss:$20 sps:$4 sm:$0xff]  }
 0x133   :  { %1668 = vmatpush1.bf16.msra.mxu1 %v3030_v40  ;;  %1791 = vmatpush1.bf16.msra.mxu0 %v3033_v43  ;;  %v2847_v55 = vpop.f32.mrb[7].mxu0  ;;  %v3104_v40 = vld [vmem:[#allocation7 + $0x464] ss:$20 sps:$4 sm:$0xff]   ;;  %v3107_v41 = vld [vmem:[#allocation7 + $0x46c] ss:$20 sps:$4 sm:$0xff]   ;;  %v106_v43 = vsub.s32 2, %v3487_v18 }
 0x134   :  { %1669 = vmatprep.subr.bf16.mxu1 %v3038_v46  ;;  %1792 = vmatprep.subr.bf16.mxu0 %v3041_v47  ;;  %v3102_v44 = vld [vmem:[#allocation7 + $0x460] ss:$20 sps:$4 sm:$0xff]   ;;  %v3105_v46 = vld [vmem:[#allocation7 + $0x468] ss:$20 sps:$4 sm:$0xff]  }
 0x135   :  { %1699 = vmatprep.mubr.bf16.mxu1 %v3518_v51  ;;  %1822 = vmatprep.mubr.bf16.mxu0 %v3518_v51  ;;  %v3110_v47 = vld [vmem:[#allocation7 + $0x48c] ss:$20 sps:$4 sm:$0xff]   ;;  %v3113_v49 = vld [vmem:[#allocation7 + $0x494] ss:$20 sps:$4 sm:$0xff]   ;;  %v107_v50 = vrot.slane %v3493_v20, %v106_v43  ;;  %v3119_v55 = vld [vmem:[#allocation7 + $0x4bc] ss:$20 sps:$4 sm:$0xff]  }
 0x136   :  { %v3108_v52 = vld [vmem:[#allocation7 + $0x488] ss:$20 sps:$4 sm:$0xff]  }
 0x137   :  { %1670 = vmatpush1.bf16.msra.mxu1 %v3036_v53  ;;  %1793 = vmatpush1.bf16.msra.mxu0 %v3039_v54  ;;  %v3111_v53 = vld [vmem:[#allocation7 + $0x490] ss:$20 sps:$4 sm:$0xff]   ;;  %v3116_v54 = vld [vmem:[#allocation7 + $0x4b4] ss:$20 sps:$4 sm:$0xff]  }
 0x138   :  { %1671 = vmatprep.subr.bf16.mxu1 %v3044_v56  ;;  %1794 = vmatprep.subr.bf16.mxu0 %v3047_v57  ;;  %v253_v56 = vadd.f32 %v3506_v33, %v107_v50  ;;  %v3114_v57 = vld [vmem:[#allocation7 + $0x4b0] ss:$20 sps:$4 sm:$0xff]   ;;  %v3126_v33 = vld [vmem:[#allocation7 + $0x500] ss:$20 sps:$4 sm:$0xff]  }
 0x139   :  { %v3176_v50 = vld [vmem:[#allocation7 + $0x10] ss:$20 sps:$4 sm:$0xff]  }
 0x13a   :  { %vm301_vm5 = vcmp.ge.f32.partialorder %v253_v56, 0.0 }
 0x13b   :  { %1672 = vmatpush1.bf16.msra.mxu1 %v3042_v58  ;;  %1795 = vmatpush1.bf16.msra.mxu0 %v3045_v59  ;;  %v3117_v58 = vld [vmem:[#allocation7 + $0x4b8] ss:$20 sps:$4 sm:$0xff]   ;;  %v3122_v59 = vld [vmem:[#allocation7 + $0x4dc] ss:$20 sps:$4 sm:$0xff]  }
 0x13c   :  { %1673 = vmatprep.subr.bf16.mxu1 %v3050_v60  ;;  %1796 = vmatprep.subr.bf16.mxu0 %v3053_v61  ;;  %v3125_v60 = vld [vmem:[#allocation7 + $0x4e4] ss:$20 sps:$4 sm:$0xff]   ;;  %v306_v61 = vmul.f32 0.2, %v253_v56 }
 0x13f   :  { %1674 = vmatpush1.bf16.msra.mxu1 %v3048_v62  ;;  %1797 = vmatpush1.bf16.msra.mxu0 %v3051_v63  ;;  %v3120_v62 = vld [vmem:[#allocation7 + $0x4d8] ss:$20 sps:$4 sm:$0xff]   ;;  %v3123_v63 = vld [vmem:[#allocation7 + $0x4e0] ss:$20 sps:$4 sm:$0xff]  }
 0x140   :  { %1675 = vmatprep.subr.bf16.mxu1 %v3056_v1  ;;  %1798 = vmatprep.subr.bf16.mxu0 %v3059_v2  ;;  %v3128_v1 = vld [vmem:[#allocation7 + $0x504] ss:$20 sps:$4 sm:$0xff]   ;;  %v3131_v2 = vld [vmem:[#allocation7 + $0x50c] ss:$20 sps:$4 sm:$0xff]  }
 0x143   :  { %1676 = vmatpush1.bf16.msra.mxu1 %v3054_v3  ;;  %1799 = vmatpush1.bf16.msra.mxu0 %v3057_v4  ;;  %v311_v3 = vsel %vm301_vm5, %v253_v56, %v306_v61  ;;  %v3129_v4 = vld [vmem:[#allocation7 + $0x508] ss:$20 sps:$4 sm:$0xff]   ;;  %v3181_v56 = vld [vmem:[#allocation7 + $0x2b8] ss:$20 sps:$4 sm:$0xff]  }
 0x144   :  { %1677 = vmatprep.subr.bf16.mxu1 %v3062_v5  ;;  %1800 = vmatprep.subr.bf16.mxu0 %v3065_v6  ;;  %v3527_v5 = vpack.c.bf16 %v311_v3, %v311_v3  ;;  %v3134_v6 = vld [vmem:[#allocation7 + $0x52c] ss:$20 sps:$4 sm:$0xff]   ;;  %v3186_v61 = vld [vmem:[#allocation7 + $0x1c8] ss:$20 sps:$4 sm:$0xff]   ;;  %v3193_v3 = vld [vmem:[#allocation7 + $0x330] ss:$20 sps:$4 sm:$0xff]  }
 0x147   :  { %1678 = vmatpush1.bf16.msra.mxu1 %v3060_v7  ;;  %1801 = vmatpush1.bf16.msra.mxu0 %v3063_v8  ;;  %v3137_v7 = vld [vmem:[#allocation7 + $0x534] ss:$20 sps:$4 sm:$0xff]  }
 0x148   :  { %1679 = vmatprep.subr.bf16.mxu1 %v3068_v9  ;;  %1802 = vmatprep.subr.bf16.mxu0 %v3071_v10  ;;  %v3132_v8 = vld [vmem:[#allocation7 + $0x528] ss:$20 sps:$4 sm:$0xff]   ;;  %v3135_v9 = vld [vmem:[#allocation7 + $0x530] ss:$20 sps:$4 sm:$0xff]  }
 0x149   :  { %v3140_v10 = vld [vmem:[#allocation7 + $0x554] ss:$20 sps:$4 sm:$0xff]  }
 0x14b   :  { %1680 = vmatpush1.bf16.msra.mxu1 %v3066_v12  ;;  %1803 = vmatpush1.bf16.msra.mxu0 %v3069_v13  ;;  %v3143_v12 = vld [vmem:[#allocation7 + $0x55c] ss:$20 sps:$4 sm:$0xff]  }
 0x14c   :  { %1681 = vmatprep.subr.bf16.mxu1 %v3074_v14  ;;  %1804 = vmatprep.subr.bf16.mxu0 %v3077_v15  ;;  %v3138_v13 = vld [vmem:[#allocation7 + $0x550] ss:$20 sps:$4 sm:$0xff]   ;;  %v3141_v14 = vld [vmem:[#allocation7 + $0x558] ss:$20 sps:$4 sm:$0xff]  }
 0x14d   :  { %v3146_v15 = vld [vmem:[#allocation7 + $0x57c] ss:$20 sps:$4 sm:$0xff]  }
 0x14f   :  { %1682 = vmatpush1.bf16.msra.mxu1 %v3072_v16  ;;  %1805 = vmatpush1.bf16.msra.mxu0 %v3075_v17  ;;  %v3149_v16 = vld [vmem:[#allocation7 + $0x584] ss:$20 sps:$4 sm:$0xff]  }
 0x150   :  { %1683 = vmatprep.subr.bf16.mxu1 %v3080_v22  ;;  %1806 = vmatprep.subr.bf16.mxu0 %v3083_v24  ;;  %v3144_v17 = vld [vmem:[#allocation7 + $0x578] ss:$20 sps:$4 sm:$0xff]   ;;  %v3147_v22 = vld [vmem:[#allocation7 + $0x580] ss:$20 sps:$4 sm:$0xff]   ;;  %v114_v24 = vsub.s32 4, %v3487_v18 }
 0x153   :  { %1684 = vmatpush1.bf16.msra.mxu1 %v3078_v25  ;;  %1807 = vmatpush1.bf16.msra.mxu0 %v3081_v26  ;;  %v3152_v25 = vld [vmem:[#allocation7 + $0x5a4] ss:$20 sps:$4 sm:$0xff]   ;;  %v3155_v26 = vld [vmem:[#allocation7 + $0x5ac] ss:$20 sps:$4 sm:$0xff]  }
 0x154   :  { %1685 = vmatprep.subr.bf16.mxu1 %v3086_v27  ;;  %1808 = vmatprep.subr.bf16.mxu0 %v3089_v28  ;;  %v3153_v27 = vld [vmem:[#allocation7 + $0x5a8] ss:$20 sps:$4 sm:$0xff]   ;;  %v115_v28 = vrot.slane %v3493_v20, %v114_v24 }
 0x155   :  { %v3170_v20 = vld [vmem:[#allocation7 + $0x61c] ss:$20 sps:$4 sm:$0xff]  }
 0x157   :  { %1686 = vmatpush1.bf16.msra.mxu1 %v3084_v29  ;;  %1809 = vmatpush1.bf16.msra.mxu0 %v3087_v30  ;;  %v3158_v29 = vld [vmem:[#allocation7 + $0x5cc] ss:$20 sps:$4 sm:$0xff]   ;;  %v3161_v30 = vld [vmem:[#allocation7 + $0x5d4] ss:$20 sps:$4 sm:$0xff]  }
 0x158   :  { %1687 = vmatprep.subr.bf16.mxu1 %v3092_v31  ;;  %1810 = vmatprep.subr.bf16.mxu0 %v3095_v32  ;;  %v3156_v31 = vld [vmem:[#allocation7 + $0x5c8] ss:$20 sps:$4 sm:$0xff]   ;;  %v3159_v32 = vld [vmem:[#allocation7 + $0x5d0] ss:$20 sps:$4 sm:$0xff]  }
 0x15b   :  { %1688 = vmatpush1.bf16.msra.mxu1 %v3090_v34  ;;  %1811 = vmatpush1.bf16.msra.mxu0 %v3093_v35  ;;  %v294_v34 = vadd.f32 %v3512_v48, %v115_v28  ;;  %v3164_v35 = vld [vmem:[#allocation7 + $0x5f4] ss:$20 sps:$4 sm:$0xff]   ;;  %v3174_v48 = vld [vmem:[#allocation7 + $0x150] ss:$20 sps:$4 sm:$0xff]  }
 0x15c   :  { %1689 = vmatprep.subr.bf16.mxu1 %v3098_v36  ;;  %1812 = vmatprep.subr.bf16.mxu0 %v3101_v37  ;;  %v3167_v36 = vld [vmem:[#allocation7 + $0x5fc] ss:$20 sps:$4 sm:$0xff]  }
 0x15d   :  { %v308_v37 = vmul.f32 0.2, %v294_v34  ;;  %vm303_vm6 = vcmp.ge.f32.partialorder %v294_v34, 0.0  ;;  %v3222_v28 = vld [vmem:[#allocation8 + $0x50] sm:$0xff]  }
 0x15f   :  { %1690 = vmatpush1.bf16.msra.mxu1 %v3096_v38  ;;  %1813 = vmatpush1.bf16.msra.mxu0 %v3099_v39  ;;  %v3162_v38 = vld [vmem:[#allocation7 + $0x5f0] ss:$20 sps:$4 sm:$0xff]   ;;  %v3165_v39 = vld [vmem:[#allocation7 + $0x5f8] ss:$20 sps:$4 sm:$0xff]  }
 0x160   :  { %1691 = vmatprep.subr.bf16.mxu1 %v3104_v40  ;;  %1814 = vmatprep.subr.bf16.mxu0 %v3107_v41  ;;  %v3173_v40 = vld [vmem:[#allocation7 + $0x624] ss:$20 sps:$4 sm:$0xff]   ;;  %v313_v41 = vsel %vm303_vm6, %v294_v34, %v308_v37 }
 0x161   :  { %v3210_v34 = vld [vmem:[#allocation7 + $0x5b0] ss:$20 sps:$4 sm:$0xff]   ;;  %v3211_v37 = vld [vmem:[#allocation7 + $0x5d8] ss:$20 sps:$4 sm:$0xff]  }
 0x163   :  { %1692 = vmatpush1.bf16.msra.mxu1 %v3102_v44  ;;  %1815 = vmatpush1.bf16.msra.mxu0 %v3105_v46  ;;  %v3168_v44 = vld [vmem:[#allocation7 + $0x618] ss:$20 sps:$4 sm:$0xff]   ;;  %v3171_v46 = vld [vmem:[#allocation7 + $0x620] ss:$20 sps:$4 sm:$0xff]  }
 0x164   :  { %1693 = vmatprep.subr.bf16.mxu1 %v3110_v47  ;;  %1816 = vmatprep.subr.bf16.mxu0 %v3113_v49  ;;  %v3175_v47 = vld [vmem:[#allocation7 + $0x3d0] ss:$20 sps:$4 sm:$0xff]   ;;  %v3538_v49 = vpack.c.bf16 %v313_v41, %v313_v41 }
 0x165   :  { %v3217_v41 = vld [vmem:[#allocation8 + $0x80] sm:$0xff]  }
 0x167   :  { %1694 = vmatpush1.bf16.msra.mxu1 %v3108_v52  ;;  %1817 = vmatpush1.bf16.msra.mxu0 %v3111_v53  ;;  %v3177_v52 = vld [vmem:[#allocation7 + $0x290] ss:$20 sps:$4 sm:$0xff]   ;;  %v3178_v53 = vld [vmem:[#allocation7 + $0x178] ss:$20 sps:$4 sm:$0xff]  }
 0x168   :  { %1695 = vmatprep.subr.bf16.mxu1 %v3116_v54  ;;  %1818 = vmatprep.subr.bf16.mxu0 %v3119_v55  ;;  %v3179_v54 = vld [vmem:[#allocation7 + $0x3f8] ss:$20 sps:$4 sm:$0xff]  }
 0x169   :  { %v3180_v55 = vld [vmem:[#allocation7 + $0x38] ss:$20 sps:$4 sm:$0xff]  }
 0x16b   :  { %1696 = vmatpush1.bf16.msra.mxu1 %v3114_v57  ;;  %1819 = vmatpush1.bf16.msra.mxu0 %v3117_v58  ;;  %v3182_v57 = vld [vmem:[#allocation7 + $0x1a0] ss:$20 sps:$4 sm:$0xff]  }
 0x16c   :  { %1697 = vmatprep.subr.bf16.mxu1 %v3122_v59  ;;  %1820 = vmatprep.subr.bf16.mxu0 %v3125_v60  ;;  %v3183_v58 = vld [vmem:[#allocation7 + $0x420] ss:$20 sps:$4 sm:$0xff]  }
 0x16d   :  { %v3184_v59 = vld [vmem:[#allocation7 + $0x60] ss:$20 sps:$4 sm:$0xff]  }
 0x16e   :  { %v3185_v60 = vld [vmem:[#allocation7 + $0x2e0] ss:$20 sps:$4 sm:$0xff]  }
 0x16f   :  { %1698 = vmatpush1.bf16.msra.mxu1 %v3120_v62  ;;  %1821 = vmatpush1.bf16.msra.mxu0 %v3123_v63  ;;  %v3187_v62 = vld [vmem:[#allocation7 + $0x448] ss:$20 sps:$4 sm:$0xff]  }
 0x170   :  { %1708 = vmatprep.subr.bf16.mxu1 %v3128_v1  ;;  %1831 = vmatprep.subr.bf16.mxu0 %v3131_v2  ;;  %v3188_v63 = vld [vmem:[#allocation7 + $0x88] ss:$20 sps:$4 sm:$0xff]   ;;  %v3190_v1 = vld [vmem:[#allocation7 + $0x1f0] ss:$20 sps:$4 sm:$0xff]  }
 0x171   :  { %v3192_v2 = vld [vmem:[#allocation7 + $0xb0] ss:$20 sps:$4 sm:$0xff]  }
 0x172   :  { %1700 = vmatmul.mubr.bf16.vlgmr.msra.gmra.mrb[4].mxu1 %v3527_v5  ;;  %1823 = vmatmul.mubr.bf16.vlgmr.msra.gmra.mrb[8].mxu0 %v3527_v5 }
 0x173   :  { %1709 = vmatpush1.bf16.msra.mxu1 %v3126_v33  ;;  %1832 = vmatpush1.bf16.msra.mxu0 %v3129_v4  ;;  %v3194_v33 = vld [vmem:[#allocation7 + $0x218] ss:$20 sps:$4 sm:$0xff]  }
 0x174   :  { %1710 = vmatprep.subr.bf16.mxu1 %v3134_v6  ;;  %1833 = vmatprep.subr.bf16.mxu0 %v3137_v7  ;;  %v3195_v4 = vld [vmem:[#allocation7 + $0x498] ss:$20 sps:$4 sm:$0xff]  }
 0x175   :  { %1740 = vmatprep.mubr.bf16.mxu1 %v3380_v0  ;;  %1863 = vmatprep.mubr.bf16.mxu0 %v3380_v0  ;;  %v3150_v0 = vld [vmem:[#allocation7 + $0x5a0] ss:$20 sps:$4 sm:$0xff]   ;;  %v3196_v6 = vld [vmem:[#allocation7 + $0xd8] ss:$20 sps:$4 sm:$0xff]  }
 0x176   :  { %v3197_v7 = vld [vmem:[#allocation7 + $0x358] ss:$20 sps:$4 sm:$0xff]  }
 0x177   :  { %1711 = vmatpush1.bf16.msra.mxu1 %v3132_v8  ;;  %1834 = vmatpush1.bf16.msra.mxu0 %v3135_v9  ;;  %v3198_v8 = vld [vmem:[#allocation7 + $0x240] ss:$20 sps:$4 sm:$0xff]  }
 0x178   :  { %1712 = vmatprep.subr.bf16.mxu1 %v3140_v10  ;;  %1835 = vmatprep.subr.bf16.mxu0 %v3143_v12  ;;  %v3199_v9 = vld [vmem:[#allocation7 + $0x4c0] ss:$20 sps:$4 sm:$0xff]  }
 0x179   :  { %v3200_v10 = vld [vmem:[#allocation7 + $0x100] ss:$20 sps:$4 sm:$0xff]  }
 0x17a   :  { %v3201_v12 = vld [vmem:[#allocation7 + $0x380] ss:$20 sps:$4 sm:$0xff]  }
 0x17b   :  { %1713 = vmatpush1.bf16.msra.mxu1 %v3138_v13  ;;  %1836 = vmatpush1.bf16.msra.mxu0 %v3141_v14  ;;  %v3202_v13 = vld [vmem:[#allocation7 + $0x268] ss:$20 sps:$4 sm:$0xff]  }
 0x17c   :  { %1714 = vmatprep.subr.bf16.mxu1 %v3146_v15  ;;  %1837 = vmatprep.subr.bf16.mxu0 %v3149_v16  ;;  %v3203_v14 = vld [vmem:[#allocation7 + $0x4e8] ss:$20 sps:$4 sm:$0xff]  }
 0x17d   :  { %v3204_v15 = vld [vmem:[#allocation7 + $0x128] ss:$20 sps:$4 sm:$0xff]  }
 0x17e   :  { %v3205_v16 = vld [vmem:[#allocation7 + $0x3a8] ss:$20 sps:$4 sm:$0xff]  }
 0x17f   :  { %1715 = vmatpush1.bf16.msra.mxu1 %v3144_v17  ;;  %1838 = vmatpush1.bf16.msra.mxu0 %v3147_v22  ;;  %v3214_v17 = vld [vmem:[#allocation8 + $0x40] sm:$0xff]  }
 0x180   :  { %1716 = vmatprep.subr.bf16.mxu1 %v3152_v25  ;;  %1839 = vmatprep.subr.bf16.mxu0 %v3155_v26  ;;  %v3206_v22 = vld [vmem:[#allocation7 + $0x510] ss:$20 sps:$4 sm:$0xff]   ;;  %v3218_v26 = vld [vmem:[#allocation8 + $0x48] sm:$0xff]  }
 0x181   :  { %v3216_v25 = vld [vmem:[#allocation8] sm:$0xff]  }
 0x183   :  { %1717 = vmatpush1.bf16.msra.mxu1 %v3150_v0  ;;  %1840 = vmatpush1.bf16.msra.mxu0 %v3153_v27  ;;  %v3207_v0 = vld [vmem:[#allocation7 + $0x538] ss:$20 sps:$4 sm:$0xff]  }
 0x184   :  { %1718 = vmatprep.subr.bf16.mxu1 %v3158_v29  ;;  %1841 = vmatprep.subr.bf16.mxu0 %v3161_v30  ;;  %v3220_v27 = vld [vmem:[#allocation8 + $0x8] sm:$0xff]   ;;  %v3208_v29 = vld [vmem:[#allocation7 + $0x560] ss:$20 sps:$4 sm:$0xff]   ;;  %v3226_v30 = vld [vmem:[#allocation8 + $0x58] sm:$0xff]  }
 0x187   :  { %1719 = vmatpush1.bf16.msra.mxu1 %v3156_v31  ;;  %1842 = vmatpush1.bf16.msra.mxu0 %v3159_v32  ;;  %v3228_v31 = vld [vmem:[#allocation8 + $0x18] sm:$0xff]   ;;  %v3230_v32 = vld [vmem:[#allocation8 + $0x60] sm:$0xff]  }
 0x188   :  { %1720 = vmatprep.subr.bf16.mxu1 %v3164_v35  ;;  %1843 = vmatprep.subr.bf16.mxu0 %v3167_v36  ;;  %v3232_v35 = vld [vmem:[#allocation8 + $0x20] sm:$0xff]   ;;  %v3234_v36 = vld [vmem:[#allocation8 + $0x68] sm:$0xff]  }
 0x18b   :  { %1721 = vmatpush1.bf16.msra.mxu1 %v3162_v38  ;;  %1844 = vmatpush1.bf16.msra.mxu0 %v3165_v39  ;;  %v3236_v38 = vld [vmem:[#allocation8 + $0x28] sm:$0xff]   ;;  %v3212_v39 = vld [vmem:[#allocation7 + $0x600] ss:$20 sps:$4 sm:$0xff]  }
 0x18c   :  { %1722 = vmatprep.subr.bf16.mxu1 %v3170_v20  ;;  %1845 = vmatprep.subr.bf16.mxu0 %v3173_v40  ;;  %v3213_v20 = vld [vmem:[#allocation7 + $0x628] ss:$20 sps:$4 sm:$0xff]   ;;  %v3215_v40 = vld [vmem:[#allocation8 + $0xc0] sm:$0xff]  }
 0x18f   :  { %1723 = vmatpush1.bf16.msra.mxu1 %v3168_v44  ;;  %1846 = vmatpush1.bf16.msra.mxu0 %v3171_v46  ;;  %v3219_v44 = vld [vmem:[#allocation8 + $0xc8] sm:$0xff]  }
 0x190   :  { %2734 = vmatprep.subr.bf16.mxu1 %v3174_v48  ;;  %2756 = vmatprep.subr.bf16.mxu0 %v3175_v47  ;;  %v3221_v46 = vld [vmem:[#allocation8 + $0x88] sm:$0xff]   ;;  %v3223_v48 = vld [vmem:[#allocation8 + $0xd0] sm:$0xff]  }
 0x191   :  { %v3225_v47 = vld [vmem:[#allocation8 + $0x90] sm:$0xff]  }
 0x192   :  { %1741 = vmatmul.mubr.bf16.vlgmr.msra.gmra.mrb[4].mxu1 %v3538_v49  ;;  %1864 = vmatmul.mubr.bf16.vlgmr.msra.gmra.mrb[8].mxu0 %v3538_v49 }
 0x193   :  { %2735 = vmatpush3.bf16.msra.mxu1 %v3176_v50  ;;  %1904 = vmatprep.mubr.bf16.mxu1 %v3508_v42  ;;  %v3189_v42 = vld [vmem:[#allocation7 + $0x308] ss:$20 sps:$4 sm:$0xff]  }
 0x194   :  { %2757 = vmatpush3.bf16.msra.mxu0 %v3177_v52  ;;  %1944 = vmatprep.mubr.bf16.mxu0 %v3518_v51  ;;  %v3191_v51 = vld [vmem:[#allocation7 + $0x470] ss:$20 sps:$4 sm:$0xff]   ;;  %v3227_v50 = vld [vmem:[#allocation8 + $0xd8] sm:$0xff]  }
 0x195   :  { %2736 = vmatprep.subr.bf16.mxu1 %v3178_v53  ;;  %2758 = vmatprep.subr.bf16.mxu0 %v3179_v54  ;;  %v3229_v52 = vld [vmem:[#allocation8 + $0x98] sm:$0xff]   ;;  %v3231_v53 = vld [vmem:[#allocation8 + $0xe0] sm:$0xff]  }
 0x196   :  { %v3233_v54 = vld [vmem:[#allocation8 + $0xa0] sm:$0xff]  }
 0x197   :  { %2737 = vmatpush3.bf16.msra.mxu1 %v3180_v55  ;;  %v3235_v55 = vld [vmem:[#allocation8 + $0xe8] sm:$0xff]  }
 0x198   :  { %2759 = vmatpush3.bf16.msra.mxu0 %v3181_v56  ;;  %2738 = vmatprep.subr.bf16.mxu1 %v3182_v57  ;;  %v3237_v56 = vld [vmem:[#allocation8 + $0xa8] sm:$0xff]   ;;  %v3239_v57 = vld [vmem:[#allocation8 + $0xf0] sm:$0xff]  }
 0x199   :  { %2760 = vmatprep.subr.bf16.mxu0 %v3183_v58  ;;  %v3240_v58 = vld [vmem:[#allocation8 + $0x30] sm:$0xff]  }
 0x19b   :  { %2739 = vmatpush3.bf16.msra.mxu1 %v3184_v59  ;;  %v3241_v59 = vld [vmem:[#allocation8 + $0xb0] sm:$0xff]  }
 0x19c   :  { %2761 = vmatpush3.bf16.msra.mxu0 %v3185_v60  ;;  %2740 = vmatprep.subr.bf16.mxu1 %v3186_v61  ;;  %v3242_v60 = vld [vmem:[#allocation8 + $0x78] sm:$0xff]  }
 0x19d   :  { %2762 = vmatprep.subr.bf16.mxu0 %v3187_v62  ;;  %v3243_v61 = vld [vmem:[#allocation8 + $0xf8] sm:$0xff]  }
 0x19e   :  { %v3244_v62 = vld [vmem:[#allocation8 + $0x38] sm:$0xff]  }
 0x19f   :  { %2741 = vmatpush3.bf16.msra.mxu1 %v3188_v63  ;;  %v3245_v63 = vld [vmem:[#allocation8 + $0xb8] sm:$0xff]  }
 0x1a0   :  { %2763 = vmatpush3.bf16.msra.mxu0 %v3189_v42  ;;  %2742 = vmatprep.subr.bf16.mxu1 %v3190_v1  ;;  %v559_v42 = vld [vmem:[%s3599_s4] sm:$0x1f] }
 0x1a1   :  { %2764 = vmatprep.subr.bf16.mxu0 %v3191_v51  ;;  %v564_v1 = vrot.slane %v559_v42, %v98_v19  ;;  %v572_v51 = vrot.slane %v559_v42, %v106_v43 }
 0x1a3   :  { %2743 = vmatpush3.bf16.msra.mxu1 %v3192_v2  ;;  %v568_v2 = vrot.slane %v559_v42, %v102_v21 }
 0x1a4   :  { %2765 = vmatpush3.bf16.msra.mxu0 %v3193_v3  ;;  %2744 = vmatprep.subr.bf16.mxu1 %v3194_v33  ;;  %v576_v3 = vrot.slane %v559_v42, %v110_v23 }
 0x1a5   :  { %2766 = vmatprep.subr.bf16.mxu0 %v3195_v4 }
 0x1a7   :  { %2745 = vmatpush3.bf16.msra.mxu1 %v3196_v6 }
 0x1a8   :  { %2767 = vmatpush3.bf16.msra.mxu0 %v3197_v7  ;;  %2746 = vmatprep.subr.bf16.mxu1 %v3198_v8 }
 0x1a9   :  { %2768 = vmatprep.subr.bf16.mxu0 %v3199_v9 }
 0x1ab   :  { %2747 = vmatpush3.bf16.msra.mxu1 %v3200_v10 }
 0x1ac   :  { %2769 = vmatpush3.bf16.msra.mxu0 %v3201_v12  ;;  %2748 = vmatprep.subr.bf16.mxu1 %v3202_v13 }
 0x1ad   :  { %2770 = vmatprep.subr.bf16.mxu0 %v3203_v14 }
 0x1af   :  { %2749 = vmatpush3.bf16.msra.mxu1 %v3204_v15 }
 0x1b0   :  { %2771 = vmatpush3.bf16.msra.mxu0 %v3205_v16  ;;  %2848 = vmatprep.subr.bf16.mxu1 %v3381_v11 }
 0x1b1   :  { %2787 = vmatprep.subr.bf16.mxu0 %v3214_v17 }
 0x1b2   :  { %1905 = vmatmul.mubr.bf16.vlgmr.msra.gmra.mrb[8].mxu1 %v3510_v45  ;;  %v3224_v45 = vld [vmem:[#allocation8 + $0x10] sm:$0xff]  }
 0x1b3   :  { %1945 = vmatmul.mubr.bf16.vlgmr.msra.gmra.mrb[12].mxu0 %v3527_v5  ;;  %2849 = vmatpush3.bf16.msra.mxu1 %v3206_v22  ;;  %v3209_v5 = vld [vmem:[#allocation7 + $0x588] ss:$20 sps:$4 sm:$0xff]  }
 0x1b4   :  { %2850 = vmatprep.subr.bf16.mxu1 %v3381_v11  ;;  %2864 = vmatprep.mubr.msk.bf16.mxu1 %vm3382_vm1, %v3381_v11 }
 0x1b5   :  { %2788 = vmatpush3.bf16.msra.mxu0 %v3216_v25 }
 0x1b6   :  { %2789 = vmatprep.subr.bf16.mxu0 %v3218_v26 }
 0x1b7   :  { %2851 = vmatpush3.bf16.msra.mxu1 %v3207_v0 }
 0x1b8   :  { %2852 = vmatprep.subr.bf16.mxu1 %v3381_v11 }
 0x1b9   :  { %2790 = vmatpush3.bf16.msra.mxu0 %v3220_v27 }
 0x1ba   :  { %2791 = vmatprep.subr.bf16.mxu0 %v3222_v28  ;;  %v3246_v28 = vld [vmem:[#allocation8 + $0x100] sm:$0xff]  }
 0x1bb   :  { %2853 = vmatpush3.bf16.msra.mxu1 %v3208_v29 }
 0x1bc   :  { %2854 = vmatprep.subr.bf16.mxu1 %v3381_v11 }
 0x1bd   :  { %2792 = vmatpush3.bf16.msra.mxu0 %v3224_v45 }
 0x1be   :  { %2793 = vmatprep.subr.bf16.mxu0 %v3226_v30  ;;  %v3247_v30 = vld [vmem:[#allocation8 + $0x108] sm:$0xff]  }
 0x1bf   :  { %2855 = vmatpush3.bf16.msra.mxu1 %v3209_v5  ;;  %v3248_v5 = vld [vmem:[#allocation8 + $0x110] sm:$0xff]  }
 0x1c0   :  { %2856 = vmatprep.subr.bf16.mxu1 %v3381_v11 }
 0x1c1   :  { %2794 = vmatpush3.bf16.msra.mxu0 %v3228_v31  ;;  %v3249_v31 = vld [vmem:[#allocation8 + $0x118] sm:$0xff]  }
 0x1c2   :  { %2795 = vmatprep.subr.bf16.mxu0 %v3230_v32  ;;  %v3250_v32 = vld [vmem:[#allocation8 + $0x120] sm:$0xff]  }
 0x1c3   :  { %2857 = vmatpush3.bf16.msra.mxu1 %v3210_v34  ;;  %v3251_v34 = vld [vmem:[#allocation8 + $0x128] sm:$0xff]  }
 0x1c4   :  { %2858 = vmatprep.subr.bf16.mxu1 %v3381_v11 }
 0x1c5   :  { %2796 = vmatpush3.bf16.msra.mxu0 %v3232_v35  ;;  %v3252_v35 = vld [vmem:[#allocation8 + $0x130] sm:$0xff]  }
 0x1c6   :  { %2797 = vmatprep.subr.bf16.mxu0 %v3234_v36 }
 0x1c7   :  { %2859 = vmatpush3.bf16.msra.mxu1 %v3211_v37  ;;  %v580_v37 = vrot.slane %v559_v42, %v114_v24 }
 0x1c8   :  { %2860 = vmatprep.subr.bf16.mxu1 %v3381_v11 }
 0x1c9   :  { %2798 = vmatpush3.bf16.msra.mxu0 %v3236_v38 }
 0x1cb   :  { %2861 = vmatpush3.bf16.msra.mxu1 %v3212_v39 }
 0x1cc   :  { %2862 = vmatprep.subr.bf16.mxu1 %v3381_v11 }
 0x1cf   :  { %2863 = vmatpush3.bf16.msra.mxu1 %v3213_v20 }
 0x1d0   :  { %2809 = vmatprep.subr.bf16.mxu1 %v3215_v40 }
 0x1d2   :  { %2865 = vmatmul.mubr.bf16.vlgmr.msra.gmra.mrb[12].mxu1 %v3538_v49  ;;  %v3238_v49 = vld [vmem:[#allocation8 + $0x70] sm:$0xff]  }
 0x1d3   :  { %2810 = vmatpush3.bf16.msra.mxu1 %v3217_v41  ;;  %2799 = vmatprep.subr.bf16.mxu0 %v3238_v49 }
 0x1d4   :  { %2811 = vmatprep.subr.bf16.mxu1 %v3219_v44  ;;  %2800 = vmatpush3.bf16.msra.mxu0 %v3240_v58 }
 0x1d5   :  { %2801 = vmatprep.subr.bf16.mxu0 %v3242_v60 }
 0x1d7   :  { %2812 = vmatpush3.bf16.msra.mxu1 %v3221_v46 }
 0x1d8   :  { %2813 = vmatprep.subr.bf16.mxu1 %v3223_v48  ;;  %2802 = vmatpush3.bf16.msra.mxu0 %v3244_v62 }
 0x1d9   :  { %2868 = vmatprep.subr.bf16.mxu0 %v3381_v11 }
 0x1db   :  { %2814 = vmatpush3.bf16.msra.mxu1 %v3225_v47  ;;  %v3253_v47 = vld [vmem:[#allocation8 + $0x138] sm:$0xff]  }
 0x1dc   :  { %2815 = vmatprep.subr.bf16.mxu1 %v3227_v50 }
 0x1df   :  { %2816 = vmatpush3.bf16.msra.mxu1 %v3229_v52 }
 0x1e0   :  { %2817 = vmatprep.subr.bf16.mxu1 %v3231_v53 }
 0x1e3   :  { %2818 = vmatpush3.bf16.msra.mxu1 %v3233_v54 }
 0x1e4   :  { %2819 = vmatprep.subr.bf16.mxu1 %v3235_v55 }
 0x1e7   :  { %2820 = vmatpush3.bf16.msra.mxu1 %v3237_v56 }
 0x1e8   :  { %2821 = vmatprep.subr.bf16.mxu1 %v3239_v57 }
 0x1eb   :  { %2822 = vmatpush3.bf16.msra.mxu1 %v3241_v59 }
 0x1ec   :  { %2823 = vmatprep.subr.bf16.mxu1 %v3243_v61  ;;  %v2690_v61 = vld [vmem:[%s3601_s6] ss:$0 sm:$0xff]  ;;  %s3342_s6 = scalar_lea.vmem %s2467_s8, 32 }
 0x1ed   :  { %p3343_p4 = scmp.ne.s32.totalorder %s2467_s8, %s3342_s6  ;;  %p3348_p6 = scmp.lt.s32.totalorder %s3342_s6, %s3342_s6 }
 0x1ef   :  { %2824 = vmatpush3.bf16.msra.mxu1 %v3245_v63  ;;  %p3349_p7 = por %p3348_p6, %p3347_p5 }
 0x1f1   :  { %p3350_p8 = pnand %p3349_p7, %p3343_p4 }
 0x265   :  { %v1742_v33 = vpop.f32.mrb[4].mxu1  ;;  %v1865_v4 = vpop.f32.mrb[8].mxu0 }
 0x266   :  { %v2888_v6 = vadd.f32 %v1742_v33, %v564_v1  ;;  %v2890_v7 = vadd.f32 %v1865_v4, %v572_v51  ;;  %v1744_v8 = vpop.f32.mrb[5].mxu1  ;;  %v1867_v9 = vpop.f32.mrb[9].mxu0 }
 0x267   :  { %v2889_v10 = vadd.f32 %v1744_v8, %v568_v2  ;;  %v2891_v12 = vadd.f32 %v1867_v9, %v576_v3  ;;  %v1746_v13 = vpop.f32.mrb[6].mxu1  ;;  %v1869_v14 = vpop.f32.mrb[10].mxu0 }
 0x268   :  { %vm1992_vm7 = vcmp.ge.f32.partialorder %v2888_v6, 0.0  ;;  %v1997_v19 = vmul.f32 0.2, %v2888_v6  ;;  %vm1994_vm8 = vcmp.ge.f32.partialorder %v2890_v7, 0.0  ;;  %v1999_v43 = vmul.f32 0.2, %v2890_v7 }
 0x269   :  { %vm1993_vm9 = vcmp.ge.f32.partialorder %v2889_v10, 0.0  ;;  %v1998_v15 = vmul.f32 0.2, %v2889_v10  ;;  %vm1995_vm10 = vcmp.ge.f32.partialorder %v2891_v12, 0.0  ;;  %v2000_v21 = vmul.f32 0.2, %v2891_v12 }
 0x26a   :  { %v2002_v16 = vsel %vm1992_vm7, %v2888_v6, %v1997_v19  ;;  %v2004_v23 = vsel %vm1994_vm8, %v2890_v7, %v1999_v43  ;;  %v1747_v17 = vpop.f32.mrb[7].mxu1  ;;  %v1870_v22 = vpop.f32.mrb[11].mxu0 }
 0x26b   :  { %v2003_v25 = vsel %vm1993_vm9, %v2889_v10, %v1998_v15  ;;  %v2005_v26 = vsel %vm1995_vm10, %v2891_v12, %v2000_v21  ;;  %v2007_v29 = vpack.c.bf16 %v2002_v16, %v2002_v16  ;;  %v2009_v45 = vpack.c.bf16 %v2004_v23, %v2004_v23 }
 0x26c   :  { %v2008_v0 = vpack.c.bf16 %v2003_v25, %v2003_v25  ;;  %v2010_v27 = vpack.c.bf16 %v2005_v26, %v2005_v26 }
 0x26e   :  { %2371 = vmatprep.mubr.bf16.mxu0 %v2008_v0  ;;  %2411 = vmatprep.mubr.bf16.mxu1 %v2010_v27 }
 0x26f   :  { %2372 = vmatmul.mubr.bf16.vlgmr.msra.gmra.mrb[16].mxu0 %v2007_v29  ;;  %2412 = vmatmul.mubr.bf16.vlgmr.msra.gmra.mrb[16].mxu1 %v2009_v45 }
 0x270   :  { %2869 = vmatpush3.bf16.msra.mxu0 %v3246_v28  ;;  %2884 = vmatprep.mubr.msk.bf16.mxu0 %vm3382_vm1, %v3381_v11 }
 0x271   :  { %2870 = vmatprep.subr.bf16.mxu0 %v3381_v11 }
 0x274   :  { %2871 = vmatpush3.bf16.msra.mxu0 %v3247_v30 }
 0x275   :  { %2872 = vmatprep.subr.bf16.mxu0 %v3381_v11 }
 0x278   :  { %2873 = vmatpush3.bf16.msra.mxu0 %v3248_v5 }
 0x279   :  { %2874 = vmatprep.subr.bf16.mxu0 %v3381_v11 }
 0x27c   :  { %2875 = vmatpush3.bf16.msra.mxu0 %v3249_v31 }
 0x27d   :  { %2876 = vmatprep.subr.bf16.mxu0 %v3381_v11 }
 0x280   :  { %2877 = vmatpush3.bf16.msra.mxu0 %v3250_v32 }
 0x281   :  { %2878 = vmatprep.subr.bf16.mxu0 %v3381_v11 }
 0x284   :  { %2879 = vmatpush3.bf16.msra.mxu0 %v3251_v34 }
 0x285   :  { %v2750_v36 = vpop.f32.mrb[8].mxu1  ;;  %2880 = vmatprep.subr.bf16.mxu0 %v3381_v11 }
 0x286   :  { %v2772_v38 = vpop.f32.mrb[12].mxu0  ;;  %v2751_v39 = vpop.f32.mrb[9].mxu1 }
 0x287   :  { %v2752_v20 = vadd.f32 %v2751_v39, %v2750_v36  ;;  %v2773_v40 = vpop.f32.mrb[13].mxu0  ;;  %v2753_v41 = vpop.f32.mrb[10].mxu1 }
 0x288   :  { %v2774_v44 = vadd.f32 %v2773_v40, %v2772_v38  ;;  %v2775_v46 = vpop.f32.mrb[14].mxu0  ;;  %v2754_v48 = vpop.f32.mrb[11].mxu1  ;;  %2881 = vmatpush3.bf16.msra.mxu0 %v3252_v35 }
 0x289   :  { %v1907_v50 = vadd.f32 %v2752_v20, %v580_v37  ;;  %v2776_v52 = vpop.f32.mrb[15].mxu0  ;;  %2882 = vmatprep.subr.bf16.mxu0 %v3381_v11 }
 0x28b   :  { %v1947_v53 = vadd.f32 %v2774_v44, %v1907_v50 }
 0x28c   :  { %2883 = vmatpush3.bf16.msra.mxu0 %v3253_v47 }
 0x2a5   :  { %v1986_v18 = vpop.f32.mrb[12].mxu1 }
 0x2a6   :  { %v1987_v24 = vadd.f32 %v1986_v18, %v1947_v53  ;;  %v2866_v54 = vpop.f32.mrb[13].mxu1 }
 0x2a7   :  { %v1989_v55 = vpop.f32.mrb[14].mxu1 }
 0x2a8   :  { %vm1996_vm11 = vcmp.ge.f32.partialorder %v1987_v24, 0.0  ;;  %v2001_v56 = vmul.f32 0.2, %v1987_v24  ;;  %v2867_v49 = vpop.f32.mrb[15].mxu1 }
 0x2aa   :  { %v2006_v57 = vsel %vm1996_vm11, %v1987_v24, %v2001_v56 }
 0x2ab   :  { %v2011_v58 = vpack.c.bf16 %v2006_v57, %v2006_v57 }
 0x2ad   :  { %2885 = vmatmul.mubr.bf16.vlgmr.msra.gmra.mrb[20].mxu0 %v2011_v58 }
 0x342   :  { %v2803_v59 = vpop.f32.mrb[16].mxu0  ;;  %v2825_v60 = vpop.f32.mrb[16].mxu1 }
 0x343   :  { %v2804_v62 = vpop.f32.mrb[17].mxu0  ;;  %v2826_v11 = vpop.f32.mrb[17].mxu1 }
 0x344   :  { %v2805_v63 = vadd.f32 %v2804_v62, %v2803_v59  ;;  %v2827_v42 = vadd.f32 %v2826_v11, %v2825_v60  ;;  %v2806_v1 = vpop.f32.mrb[18].mxu0  ;;  %v2828_v51 = vpop.f32.mrb[18].mxu1 }
 0x345   :  { %v2807_v2 = vpop.f32.mrb[19].mxu0  ;;  %v2829_v3 = vpop.f32.mrb[19].mxu1 }
 0x346   :  { %v2374_v33 = vadd.f32 %v2805_v63, %v2690_v61 }
 0x348   :  { %v2414_v4 = vadd.f32 %v2827_v42, %v2374_v33 }
 0x380   :  { %v2453_v6 = vpop.f32.mrb[20].mxu0 }
 0x381   :  { %v2454_v7 = vadd.f32 %v2453_v6, %v2414_v4  ;;  %v2886_v8 = vpop.f32.mrb[21].mxu0 }
 0x382   :  { %v2456_v9 = vpop.f32.mrb[22].mxu0 }
 0x383   :  { %2459 = vst [vmem:[#allocation10] sm:$0x3] %v2454_v7  ;;  %v2887_v10 = vpop.f32.mrb[23].mxu0 }
 0x384   :  { %3353 = shalt.err (!%p3350_p8)
}
 0x385   :  { %s3354_s13 = scalar_lea.hbm %s3602_s7, 32 }
 0x386   :  { %p3355_p9 = scmp.ne.s32.totalorder %s3602_s7, %s3354_s13  ;;  %p3358_p10 = scmp.lt.u32.totalorder %s3354_s13, %s3602_s7 }
 0x388   :  { %p3360_p11 = pnand %p3358_p10, %p3355_p9 }
 0x38a   :  { %3363 = shalt.err (!%p3360_p11)
}
 0x38b   :  { %2469 = dma.vmem_to_hbm [thread:$0]  %s2467_s8, 32, %s3602_s7, [#allocation4]  }
 0x38c   :  { %3370 = dma.done.wait [#allocation4], 32  }
 0x38d   :  { %3371 = vsyncadd [#allocation4], 4294967264 }
 0x38e   :  { %2473 = vsyncpa [#allocation3], 1 }
 0x38f   :  { %2474 = vsyncpa [#allocation6], 1 }
 0x390   :  { %2475 = vsyncpa [#allocation9], 1 }
 0x391   :  { %2476 = vsyncpa [#allocation4], 1 }

</bundles_post_ra>
